<compile_context>
chip_gen: v7x
topology: tpu7x:2x2x1
jax: 0.10.0
libtpu: 0.0.40
codegen_flags: <defaults>
</compile_context>

<pallas_src>
import functools
import math

import jax
import jax.numpy as jnp
from jax.experimental import pallas as pl
from jax.experimental.pallas import tpu as pltpu


# KAT_Group rational coefficients (shared across groups at init).
# 'gelu' init: fitted rational approximation of GELU.
GELU_NUM = (-0.0012423594497499122, 0.5080497063245629, 0.41586363182937475,
            0.13022718688035761, 0.024355900098993424, 0.00290283948155535)
GELU_DEN = (-0.06675015696494944, 0.17927646217001553, 0.03746682605496631,
            1.6561610853276082e-10)
# 'identity' init is P(x) = x, Q(x) = 1 -> exact no-op, elided in the kernel.


# ---------------------------------------------------------------- helpers ---
def _layernorm(x, w, b, eps=1e-5):
    mu = jnp.mean(x, axis=-1, keepdims=True)
    var = jnp.mean((x - mu) ** 2, axis=-1, keepdims=True)
    return (x - mu) * jax.lax.rsqrt(var + eps) * w + b


def _rational_const(x, num, den):
    """y = P5(x) / (1 + |b1*x + b2*x^2 + b3*x^3 + b4*x^4|).

    Coefficients are Python constants (constant-folded). Q >= 1, so the EUP
    approximate reciprocal (separate issue slot) is well conditioned here."""
    a0, a1, a2, a3, a4, a5 = num
    b1, b2, b3, b4 = den
    p = a0 + x * (a1 + x * (a2 + x * (a3 + x * (a4 + x * a5))))
    q = 1.0 + jnp.abs(x * (b1 + x * (b2 + x * (b3 + x * b4))))
    return p * pl.reciprocal(q, approx=True)


# ----------------------------------------------------------------- kernel ---
def block_kernel(num_heads, tq, mm_dtype,
                 x_ref,
                 wq_ref, bq_ref, wkv_ref, bkv_ref, wo_ref, bo_ref,
                 ln1_w_ref, ln1_b_ref,
                 fc1_w_ref, fc1_b_ref, fc2_w_ref, fc2_b_ref,
                 ln2_w_ref, ln2_b_ref,
                 o_ref,
                 k_scr, v_scr, ctx_scr):
    H = num_heads
    N, D = x_ref.shape[1], x_ref.shape[2]
    hd = D // H
    qi = pl.program_id(1)

    # ---- K/V projection for the full sequence, once per batch (qi == 0). ----
    # Scratch persists across the "arbitrary" q-tile axis, so later tiles of
    # the same batch reuse the cached K/V.
    @pl.when(qi == 0)
    def _():
        x_full = x_ref[0].astype(mm_dtype)                          # (N, D)
        kv = jnp.dot(x_full, wkv_ref[...],
                     preferred_element_type=jnp.float32) + bkv_ref[...]  # (N,2D)
        k_scr[...] = kv[:, :D].astype(mm_dtype)
        v_scr[...] = kv[:, D:].astype(mm_dtype)

    q_start = pl.multiple_of(qi * tq, tq)
    x_tile = x_ref[0, pl.ds(q_start, tq), :]                        # (TQ, D)
    x_tile_f32 = x_tile.astype(jnp.float32)

    # ---- Q projection for this tile (1/sqrt(hd) folded into wq/bq). ----
    q = jnp.dot(x_tile.astype(mm_dtype), wq_ref[...],
                preferred_element_type=jnp.float32) + bq_ref[...]   # (TQ, D)

    # ---- per-head attention; ctx written head-concatenated along lanes. ----
    for h in range(H):
        lo = h * hd
        q_h = q[:, lo:lo + hd].astype(mm_dtype)                     # (TQ, hd)
        k_h = k_scr[:, lo:lo + hd]                                  # (N, hd)
        v_h = v_scr[:, lo:lo + hd]                                  # (N, hd)
        s = jnp.einsum("qe,ke->qk", q_h, k_h,
                       preferred_element_type=jnp.float32)          # (TQ, N)
        s = s - jnp.max(s, axis=-1, keepdims=True)
        p = jnp.exp(s)
        denom = jnp.sum(p, axis=-1, keepdims=True)
        p = p * (1.0 / denom)               # exact softmax normalization
        ctx_h = jnp.dot(p.astype(mm_dtype), v_h,
                        preferred_element_type=jnp.float32)         # (TQ, hd)
        ctx_scr[:, lo:lo + hd] = ctx_h.astype(mm_dtype)

    # ---- output projection: one dense (TQ, D) @ (D, D) matmul. ----
    attn = jnp.dot(ctx_scr[...], wo_ref[...],
                   preferred_element_type=jnp.float32) + bo_ref[...]

    # ---- residual + norm1 ----
    x1 = _layernorm(x_tile_f32 + attn, ln1_w_ref[...], ln1_b_ref[...])

    # ---- KAN mlp: act1 (identity, elided) -> fc1 -> act2 (gelu) -> fc2 ----
    h1 = jnp.dot(x1.astype(mm_dtype), fc1_w_ref[...],
                 preferred_element_type=jnp.float32) + fc1_b_ref[...]
    h1 = _rational_const(h1, GELU_NUM, GELU_DEN)
    h2 = jnp.dot(h1.astype(mm_dtype), fc2_w_ref[...],
                 preferred_element_type=jnp.float32) + fc2_b_ref[...]

    # ---- residual + norm2 ----
    out = _layernorm(x1 + h2, ln2_w_ref[...], ln2_b_ref[...])
    o_ref[0] = out.astype(o_ref.dtype)


# ---------------------------------------------------------------- wrapper ---
def block_forward(x, params, num_heads, *, q_tile=None, mm_dtype=jnp.bfloat16):
    B, N, D = x.shape
    H = num_heads
    assert D % H == 0
    hd = D // H
    scale = 1.0 / math.sqrt(hd)

    # ---- q-tile selection ----
    if q_tile is None:
        q_tile = 256
    tq = min(int(q_tile), N)
    if N % tq != 0:
        tq = max(d for d in range(1, tq + 1) if N % d == 0)
    if B == 1 and tq == N and N >= 16 and (N // 2) % 8 == 0:
        tq = N // 2        # keep >= 2 grid steps so both v7x TCs get work
    n_qt = N // tq

    # ---- one-time weight rearrangement (trace time, outside the kernel) ----
    w_in = params["w_in"]                      # (3D, D): rows = [Wq; Wk; Wv]
    b_in = params["b_in"]                      # (3D,)
    wq_t = (w_in[:D] * scale).T.astype(mm_dtype)                   # (D, D)
    wkv_t = jnp.concatenate([w_in[D:2 * D].T, w_in[2 * D:].T],
                            axis=1).astype(mm_dtype)               # (D, 2D)
    bq = (b_in[:D] * scale).reshape(1, D).astype(jnp.float32)
    bkv = b_in[D:].reshape(1, 2 * D).astype(jnp.float32)
    wo_t = params["w_out"].T.astype(mm_dtype)                      # (D, D)
    bo = params["b_out"].reshape(1, D).astype(jnp.float32)
    fc1_w_t = params["fc1_w"].T.astype(mm_dtype)                   # (D, hidden)
    fc2_w_t = params["fc2_w"].T.astype(mm_dtype)                   # (hidden, D)
    fc1_b = params["fc1_b"].reshape(1, -1).astype(jnp.float32)
    fc2_b = params["fc2_b"].reshape(1, -1).astype(jnp.float32)
    hidden = fc1_w_t.shape[1]
    ln1_w = params["ln1_w"].reshape(1, D).astype(jnp.float32)
    ln1_b = params["ln1_b"].reshape(1, D).astype(jnp.float32)
    ln2_w = params["ln2_w"].reshape(1, D).astype(jnp.float32)
    ln2_b = params["ln2_b"].reshape(1, D).astype(jnp.float32)

    weight_args = (wq_t, bq, wkv_t, bkv, wo_t, bo,
                   ln1_w, ln1_b, fc1_w_t, fc1_b, fc2_w_t, fc2_b, ln2_w, ln2_b)
    args = (x,) + weight_args

    def const_spec(a):                         # grid-invariant full block
        nd = a.ndim
        # TODO(synk): pipeline_mode=pl.Buffered(1) here would drop the second
        # pipeline buffer for these never-changing blocks (helps v7x VMEM).
        return pl.BlockSpec(a.shape, lambda b, qi, _nd=nd: (0,) * _nd)

    in_specs = [pl.BlockSpec((1, N, D), lambda b, qi: (b, 0, 0))]   # x
    in_specs += [const_spec(a) for a in weight_args]
    out_spec = pl.BlockSpec((1, tq, D), lambda b, qi: (b, qi, 0))

    # ---- generation-aware VMEM budget ----
    mm_item = jnp.dtype(mm_dtype).itemsize
    weight_bytes = sum(int(a.size) * a.dtype.itemsize for a in weight_args)
    x_block = N * D * x.dtype.itemsize
    out_block = tq * D * x.dtype.itemsize
    scratch_bytes = (2 * N * D + tq * D) * mm_item
    act_bytes = 4 * (2 * N * D + 3 * tq * D + 2 * tq * N
                     + 2 * tq * hidden + 6 * tq * D)
    need = (2 * (weight_bytes + x_block + out_block)
            + scratch_bytes + act_bytes + (4 << 20))
    phys = None
    try:
        info = pltpu.get_tpu_info()
        phys = getattr(info, "vmem_capacity_bytes", None)
    except Exception:
        phys = None
    if phys is None:
        phys = 64 << 20            # conservative: v7x per-TensorCore VMEM
    cap = int(phys) * 4 // 5       # leave headroom for compiler scratch
    vmem_limit = int(min(cap, max(need, 32 << 20)))

    kernel = functools.partial(block_kernel, H, tq, mm_dtype)
    return pl.pallas_call(
        kernel,
        out_shape=jax.ShapeDtypeStruct((B, N, D), x.dtype),
        grid_spec=pltpu.PrefetchScalarGridSpec(
            num_scalar_prefetch=0,
            grid=(B, n_qt),
            in_specs=in_specs,
            out_specs=out_spec,
            scratch_shapes=[pltpu.VMEM((N, D), mm_dtype),   # K cache
                            pltpu.VMEM((N, D), mm_dtype),   # V cache
                            pltpu.VMEM((tq, D), mm_dtype)]),  # ctx (head-concat)
        compiler_params=pltpu.CompilerParams(
            dimension_semantics=("parallel", "arbitrary"),
            vmem_limit_bytes=vmem_limit),
    )(*args)


# ----------------------------------------------------- pure-JAX reference ---
def block_reference(x, p, num_heads):
    B, N, D = x.shape
    hd = D // num_heads
    qkv = x @ p["w_in"].T + p["b_in"]
    q, k, v = jnp.split(qkv, 3, axis=-1)

    def heads(t):
        return t.reshape(B, N, num_heads, hd).transpose(0, 2, 1, 3)

    qh, kh, vh = heads(q), heads(k), heads(v)
    s = jnp.einsum("bhnd,bhmd->bhnm", qh, kh) / math.sqrt(hd)
    a = jax.nn.softmax(s, axis=-1)
    o = jnp.einsum("bhnm,bhmd->bhnd", a, vh).transpose(0, 2, 1, 3).reshape(B, N, D)
    attn = o @ p["w_out"].T + p["b_out"]

    x1 = _layernorm(x + attn, p["ln1_w"], p["ln1_b"])
    h = x1                                    # act1: identity rational (exact)
    h = h @ p["fc1_w"].T + p["fc1_b"]
    num, den = p["num_gelu"], p["den_gelu"]
    P = num[0] + h * (num[1] + h * (num[2] + h * (num[3] + h * (num[4] + h * num[5]))))
    Q = 1.0 + jnp.abs(h * (den[0] + h * (den[1] + h * (den[2] + h * den[3]))))
    h = P / Q
    h = h @ p["fc2_w"].T + p["fc2_b"]
    return _layernorm(x1 + h, p["ln2_w"], p["ln2_b"])


# ------------------------------------------------------------------- main ---
def make_params(key, dim, num_heads, mlp_ratio=4.0):
    hidden = int(dim * mlp_ratio)
    ks = jax.random.split(key, 8)
    std = 0.05
    return {
        "w_in":  jax.random.normal(ks[0], (3 * dim, dim), jnp.float32) * std,
        "b_in":  jax.random.normal(ks[1], (3 * dim,), jnp.float32) * std,
        "w_out": jax.random.normal(ks[2], (dim, dim), jnp.float32) * std,
        "b_out": jax.random.normal(ks[3], (dim,), jnp.float32) * std,
        "ln1_w": jnp.ones((dim,), jnp.float32),
        "ln1_b": jnp.zeros((dim,), jnp.float32),
        "fc1_w": jax.random.normal(ks[4], (hidden, dim), jnp.float32) * std,
        "fc1_b": jax.random.normal(ks[5], (hidden,), jnp.float32) * std,
        "fc2_w": jax.random.normal(ks[6], (dim, hidden), jnp.float32) * std,
        "fc2_b": jax.random.normal(ks[7], (dim,), jnp.float32) * std,
        "ln2_w": jnp.ones((dim,), jnp.float32),
        "ln2_b": jnp.zeros((dim,), jnp.float32),
        "num_gelu": jnp.array(GELU_NUM, jnp.float32),
        "den_gelu": jnp.array(GELU_DEN, jnp.float32),
    }


if __name__ == "__main__":
    # Small but lane-dense shapes: D is a multiple of 128 so all last dims are
    # full-lane. N=16 with q_tile=8 -> grid=(2, 2), exercising the K/V cache.
    B, N, D, H = 2, 16, 128, 4
    key = jax.random.PRNGKey(0)
    kx, kp = jax.random.split(key)
    x = jax.random.normal(kx, (B, N, D), jnp.float32)
    params = make_params(kp, D, H, mlp_ratio=4.0)

    ref = block_reference(x, params, H)

    # f32 MXU operands (near-exact path; approx recip only in the GELU rational).
    out = block_forward(x, params, H, q_tile=8, mm_dtype=jnp.float32)
    out = jax.block_until_ready(out)
    assert out.shape == (B, N, D)
    assert jnp.allclose(out, ref, atol=2e-2, rtol=2e-2), (
        f"f32 max abs err {jnp.max(jnp.abs(out - ref))}")

    # Default bf16 MXU operands (fast path on all generations), f32 accumulation.
    out_bf16 = block_forward(x, params, H)
    out_bf16 = jax.block_until_ready(out_bf16)
    assert out_bf16.shape == (B, N, D)
    assert jnp.allclose(out_bf16, ref, atol=1e-1, rtol=1e-1), (
        f"bf16 max abs err {jnp.max(jnp.abs(out_bf16 - ref))}")

    print("KERNEL_OK")
</pallas_src>

<mosaic_0001>
module attributes {stable_mosaic.version = 11 : i64} {
  func.func @block_kernel(%arg0: i32, %arg1: i32, %arg2: memref<1x16x128xf32, #tpu.memory_space<vmem>>, %arg3: memref<128x128xf32, #tpu.memory_space<vmem>>, %arg4: memref<1x128xf32, #tpu.memory_space<vmem>>, %arg5: memref<128x256xf32, #tpu.memory_space<vmem>>, %arg6: memref<1x256xf32, #tpu.memory_space<vmem>>, %arg7: memref<128x128xf32, #tpu.memory_space<vmem>>, %arg8: memref<1x128xf32, #tpu.memory_space<vmem>>, %arg9: memref<1x128xf32, #tpu.memory_space<vmem>>, %arg10: memref<1x128xf32, #tpu.memory_space<vmem>>, %arg11: memref<128x512xf32, #tpu.memory_space<vmem>>, %arg12: memref<1x512xf32, #tpu.memory_space<vmem>>, %arg13: memref<512x128xf32, #tpu.memory_space<vmem>>, %arg14: memref<1x128xf32, #tpu.memory_space<vmem>>, %arg15: memref<1x128xf32, #tpu.memory_space<vmem>>, %arg16: memref<1x128xf32, #tpu.memory_space<vmem>>, %arg17: memref<1x8x128xf32, #tpu.memory_space<vmem>>, %arg18: memref<16x128xf32, #tpu.memory_space<vmem>>, %arg19: memref<16x128xf32, #tpu.memory_space<vmem>>, %arg20: memref<8x128xf32, #tpu.memory_space<vmem>>) attributes {dimension_semantics = [#tpu.dimension_semantics<parallel>, #tpu.dimension_semantics<arbitrary>], iteration_bounds = array<i64: 2, 2>, scalar_prefetch = 0 : i64, scratch_operands = 3 : i64, tpu.core_type = #tpu.core_type<tc>, window_params = [{transform_indices = @transform_0, window_bounds = array<i64: 1, 16, 128>}, {pipeline_mode = #tpu.pipeline_mode<synchronous>, transform_indices = @transform_1, window_bounds = array<i64: 128, 128>}, {pipeline_mode = #tpu.pipeline_mode<synchronous>, transform_indices = @transform_2, window_bounds = array<i64: 1, 128>}, {pipeline_mode = #tpu.pipeline_mode<synchronous>, transform_indices = @transform_3, window_bounds = array<i64: 128, 256>}, {pipeline_mode = #tpu.pipeline_mode<synchronous>, transform_indices = @transform_4, window_bounds = array<i64: 1, 256>}, {pipeline_mode = #tpu.pipeline_mode<synchronous>, transform_indices = @transform_5, window_bounds = array<i64: 128, 128>}, {pipeline_mode = #tpu.pipeline_mode<synchronous>, transform_indices = @transform_6, window_bounds = array<i64: 1, 128>}, {pipeline_mode = #tpu.pipeline_mode<synchronous>, transform_indices = @transform_7, window_bounds = array<i64: 1, 128>}, {pipeline_mode = #tpu.pipeline_mode<synchronous>, transform_indices = @transform_8, window_bounds = array<i64: 1, 128>}, {pipeline_mode = #tpu.pipeline_mode<synchronous>, transform_indices = @transform_9, window_bounds = array<i64: 128, 512>}, {pipeline_mode = #tpu.pipeline_mode<synchronous>, transform_indices = @transform_10, window_bounds = array<i64: 1, 512>}, {pipeline_mode = #tpu.pipeline_mode<synchronous>, transform_indices = @transform_11, window_bounds = array<i64: 512, 128>}, {pipeline_mode = #tpu.pipeline_mode<synchronous>, transform_indices = @transform_12, window_bounds = array<i64: 1, 128>}, {pipeline_mode = #tpu.pipeline_mode<synchronous>, transform_indices = @transform_13, window_bounds = array<i64: 1, 128>}, {pipeline_mode = #tpu.pipeline_mode<synchronous>, transform_indices = @transform_14, window_bounds = array<i64: 1, 128>}, {transform_indices = @transform_15, window_bounds = array<i64: 1, 8, 128>}]} {
    %c0_i32 = arith.constant 0 : i32
    %0 = arith.cmpi eq, %arg1, %c0_i32 : i32
    %1 = arith.extui %0 : i1 to i32
    %c0_i32_0 = arith.constant 0 : i32
    %2 = arith.cmpi ne, %1, %c0_i32_0 : i32
    scf.if %2 {
      %c0_96 = arith.constant 0 : index
      %c0_97 = arith.constant 0 : index
      %c0_98 = arith.constant 0 : index
      %182 = vector.load %arg2[%c0_96, %c0_97, %c0_98] : memref<1x16x128xf32, #tpu.memory_space<vmem>>, vector<1x16x128xf32>
      %183 = vector.shape_cast %182 : vector<1x16x128xf32> to vector<16x128xf32>
      %c0_99 = arith.constant 0 : index
      %c0_100 = arith.constant 0 : index
      %184 = vector.load %arg5[%c0_99, %c0_100] : memref<128x256xf32, #tpu.memory_space<vmem>>, vector<128x256xf32>
      %cst_101 = arith.constant dense<0.000000e+00> : vector<16x256xf32>
      %185 = tpu.matmul %183, %184, %cst_101 {dimension_numbers = #tpu.dot_dimension_numbers<[1], [0], [0], [1], [0, 0, 1, 1], [], []>} : vector<16x128xf32>, vector<128x256xf32>, vector<16x256xf32> -> vector<16x256xf32>
      %c0_102 = arith.constant 0 : index
      %c0_103 = arith.constant 0 : index
      %186 = vector.load %arg6[%c0_102, %c0_103] : memref<1x256xf32, #tpu.memory_space<vmem>>, vector<1x256xf32>
      %187 = vector.broadcast %186 : vector<1x256xf32> to vector<16x256xf32>
      %188 = arith.addf %185, %187 : vector<16x256xf32>
      %189 = vector.extract_strided_slice %188 {offsets = [0, 0], sizes = [16, 128], strides = [1, 1]} : vector<16x256xf32> to vector<16x128xf32>
      %c0_104 = arith.constant 0 : index
      %c0_105 = arith.constant 0 : index
      %190 = vector.load %arg18[%c0_104, %c0_105] : memref<16x128xf32, #tpu.memory_space<vmem>>, vector<16x128xf32>
      tpu.vector_store %arg18[%c0_104, %c0_105], %189 {strides = array<i32>} : memref<16x128xf32, #tpu.memory_space<vmem>>, vector<16x128xf32>,
      %191 = vector.extract_strided_slice %188 {offsets = [0, 128], sizes = [16, 128], strides = [1, 1]} : vector<16x256xf32> to vector<16x128xf32>
      %c0_106 = arith.constant 0 : index
      %c0_107 = arith.constant 0 : index
      %192 = vector.load %arg19[%c0_106, %c0_107] : memref<16x128xf32, #tpu.memory_space<vmem>>, vector<16x128xf32>
      tpu.vector_store %arg19[%c0_106, %c0_107], %191 {strides = array<i32>} : memref<16x128xf32, #tpu.memory_space<vmem>>, vector<16x128xf32>,
    } else {
    }
    %c8_i32 = arith.constant 8 : i32
    %3 = arith.muli %arg1, %c8_i32 : i32
    %4 = tpu.assume_multiple %3, 8 : i32
    %c0 = arith.constant 0 : index
    %5 = arith.index_cast %4 : i32 to index
    %c0_1 = arith.constant 0 : index
    %6 = vector.load %arg2[%c0, %5, %c0_1] : memref<1x16x128xf32, #tpu.memory_space<vmem>>, vector<1x8x128xf32>
    %7 = vector.shape_cast %6 : vector<1x8x128xf32> to vector<8x128xf32>
    %c0_2 = arith.constant 0 : index
    %c0_3 = arith.constant 0 : index
    %8 = vector.load %arg3[%c0_2, %c0_3] : memref<128x128xf32, #tpu.memory_space<vmem>>, vector<128x128xf32>
    %cst = arith.constant dense<0.000000e+00> : vector<8x128xf32>
    %9 = tpu.matmul %7, %8, %cst {dimension_numbers = #tpu.dot_dimension_numbers<[1], [0], [0], [1], [0, 0, 1, 1], [], []>} : vector<8x128xf32>, vector<128x128xf32>, vector<8x128xf32> -> vector<8x128xf32>
    %c0_4 = arith.constant 0 : index
    %c0_5 = arith.constant 0 : index
    %10 = vector.load %arg4[%c0_4, %c0_5] : memref<1x128xf32, #tpu.memory_space<vmem>>, vector<1x128xf32>
    %11 = vector.broadcast %10 : vector<1x128xf32> to vector<8x128xf32>
    %12 = arith.addf %9, %11 : vector<8x128xf32>
    %13 = vector.extract_strided_slice %12 {offsets = [0, 0], sizes = [8, 32], strides = [1, 1]} : vector<8x128xf32> to vector<8x32xf32>
    %c0_6 = arith.constant 0 : index
    %c0_7 = arith.constant 0 : index
    %14 = vector.load %arg18[%c0_6, %c0_7] : memref<16x128xf32, #tpu.memory_space<vmem>>, vector<16x32xf32>
    %c0_8 = arith.constant 0 : index
    %c0_9 = arith.constant 0 : index
    %15 = vector.load %arg19[%c0_8, %c0_9] : memref<16x128xf32, #tpu.memory_space<vmem>>, vector<16x32xf32>
    "tpu.trace_start"() <{level = 10 : i32, message = "qe,ke->qk"}> : () -> ()
    %cst_10 = arith.constant dense<0.000000e+00> : vector<8x16xf32>
    %16 = tpu.matmul %13, %14, %cst_10 {dimension_numbers = #tpu.dot_dimension_numbers<[1], [1], [0], [0], [0, 0, 1, 0], [], []>} : vector<8x32xf32>, vector<16x32xf32>, vector<8x16xf32> -> vector<8x16xf32>
    "tpu.trace_stop"() : () -> ()
    %cst_11 = arith.constant dense<0xFF800000> : vector<8xf32>
    %17 = vector.multi_reduction <maximumf>, %16, %cst_11 [1] : vector<8x16xf32> to vector<8xf32>
    %18 = vector.shape_cast %17 : vector<8xf32> to vector<8x1xf32>
    %19 = vector.broadcast %18 : vector<8x1xf32> to vector<8x16xf32>
    %20 = arith.subf %16, %19 : vector<8x16xf32>
    %21 = math.exp %20 : vector<8x16xf32>
    %cst_12 = arith.constant dense<0.000000e+00> : vector<8xf32>
    %22 = vector.multi_reduction <add>, %21, %cst_12 [1] : vector<8x16xf32> to vector<8xf32>
    %23 = vector.shape_cast %22 : vector<8xf32> to vector<8x1xf32>
    %cst_13 = arith.constant 1.000000e+00 : f32
    %24 = vector.broadcast %cst_13 : f32 to vector<8x1xf32>
    %25 = arith.divf %24, %23 : vector<8x1xf32>
    %26 = vector.broadcast %25 : vector<8x1xf32> to vector<8x16xf32>
    %27 = arith.mulf %21, %26 : vector<8x16xf32>
    %cst_14 = arith.constant dense<0.000000e+00> : vector<8x32xf32>
    %28 = tpu.matmul %27, %15, %cst_14 {dimension_numbers = #tpu.dot_dimension_numbers<[1], [0], [0], [1], [0, 0, 1, 1], [], []>} : vector<8x16xf32>, vector<16x32xf32>, vector<8x32xf32> -> vector<8x32xf32>
    %c0_15 = arith.constant 0 : index
    %c0_16 = arith.constant 0 : index
    %29 = vector.load %arg20[%c0_15, %c0_16] : memref<8x128xf32, #tpu.memory_space<vmem>>, vector<8x32xf32>
    tpu.vector_store %arg20[%c0_15, %c0_16], %28 {strides = array<i32>} : memref<8x128xf32, #tpu.memory_space<vmem>>, vector<8x32xf32>,
    %30 = vector.extract_strided_slice %12 {offsets = [0, 32], sizes = [8, 32], strides = [1, 1]} : vector<8x128xf32> to vector<8x32xf32>
    %c0_17 = arith.constant 0 : index
    %c32 = arith.constant 32 : index
    %31 = vector.load %arg18[%c0_17, %c32] : memref<16x128xf32, #tpu.memory_space<vmem>>, vector<16x32xf32>
    %c0_18 = arith.constant 0 : index
    %c32_19 = arith.constant 32 : index
    %32 = vector.load %arg19[%c0_18, %c32_19] : memref<16x128xf32, #tpu.memory_space<vmem>>, vector<16x32xf32>
    "tpu.trace_start"() <{level = 10 : i32, message = "qe,ke->qk"}> : () -> ()
    %cst_20 = arith.constant dense<0.000000e+00> : vector<8x16xf32>
    %33 = tpu.matmul %30, %31, %cst_20 {dimension_numbers = #tpu.dot_dimension_numbers<[1], [1], [0], [0], [0, 0, 1, 0], [], []>} : vector<8x32xf32>, vector<16x32xf32>, vector<8x16xf32> -> vector<8x16xf32>
    "tpu.trace_stop"() : () -> ()
    %cst_21 = arith.constant dense<0xFF800000> : vector<8xf32>
    %34 = vector.multi_reduction <maximumf>, %33, %cst_21 [1] : vector<8x16xf32> to vector<8xf32>
    %35 = vector.shape_cast %34 : vector<8xf32> to vector<8x1xf32>
    %36 = vector.broadcast %35 : vector<8x1xf32> to vector<8x16xf32>
    %37 = arith.subf %33, %36 : vector<8x16xf32>
    %38 = math.exp %37 : vector<8x16xf32>
    %cst_22 = arith.constant dense<0.000000e+00> : vector<8xf32>
    %39 = vector.multi_reduction <add>, %38, %cst_22 [1] : vector<8x16xf32> to vector<8xf32>
    %40 = vector.shape_cast %39 : vector<8xf32> to vector<8x1xf32>
    %cst_23 = arith.constant 1.000000e+00 : f32
    %41 = vector.broadcast %cst_23 : f32 to vector<8x1xf32>
    %42 = arith.divf %41, %40 : vector<8x1xf32>
    %43 = vector.broadcast %42 : vector<8x1xf32> to vector<8x16xf32>
    %44 = arith.mulf %38, %43 : vector<8x16xf32>
    %cst_24 = arith.constant dense<0.000000e+00> : vector<8x32xf32>
    %45 = tpu.matmul %44, %32, %cst_24 {dimension_numbers = #tpu.dot_dimension_numbers<[1], [0], [0], [1], [0, 0, 1, 1], [], []>} : vector<8x16xf32>, vector<16x32xf32>, vector<8x32xf32> -> vector<8x32xf32>
    %c0_25 = arith.constant 0 : index
    %c32_26 = arith.constant 32 : index
    %46 = vector.load %arg20[%c0_25, %c32_26] : memref<8x128xf32, #tpu.memory_space<vmem>>, vector<8x32xf32>
    tpu.vector_store %arg20[%c0_25, %c32_26], %45 {strides = array<i32>} : memref<8x128xf32, #tpu.memory_space<vmem>>, vector<8x32xf32>,
    %47 = vector.extract_strided_slice %12 {offsets = [0, 64], sizes = [8, 32], strides = [1, 1]} : vector<8x128xf32> to vector<8x32xf32>
    %c0_27 = arith.constant 0 : index
    %c64 = arith.constant 64 : index
    %48 = vector.load %arg18[%c0_27, %c64] : memref<16x128xf32, #tpu.memory_space<vmem>>, vector<16x32xf32>
    %c0_28 = arith.constant 0 : index
    %c64_29 = arith.constant 64 : index
    %49 = vector.load %arg19[%c0_28, %c64_29] : memref<16x128xf32, #tpu.memory_space<vmem>>, vector<16x32xf32>
    "tpu.trace_start"() <{level = 10 : i32, message = "qe,ke->qk"}> : () -> ()
    %cst_30 = arith.constant dense<0.000000e+00> : vector<8x16xf32>
    %50 = tpu.matmul %47, %48, %cst_30 {dimension_numbers = #tpu.dot_dimension_numbers<[1], [1], [0], [0], [0, 0, 1, 0], [], []>} : vector<8x32xf32>, vector<16x32xf32>, vector<8x16xf32> -> vector<8x16xf32>
    "tpu.trace_stop"() : () -> ()
    %cst_31 = arith.constant dense<0xFF800000> : vector<8xf32>
    %51 = vector.multi_reduction <maximumf>, %50, %cst_31 [1] : vector<8x16xf32> to vector<8xf32>
    %52 = vector.shape_cast %51 : vector<8xf32> to vector<8x1xf32>
    %53 = vector.broadcast %52 : vector<8x1xf32> to vector<8x16xf32>
    %54 = arith.subf %50, %53 : vector<8x16xf32>
    %55 = math.exp %54 : vector<8x16xf32>
    %cst_32 = arith.constant dense<0.000000e+00> : vector<8xf32>
    %56 = vector.multi_reduction <add>, %55, %cst_32 [1] : vector<8x16xf32> to vector<8xf32>
    %57 = vector.shape_cast %56 : vector<8xf32> to vector<8x1xf32>
    %cst_33 = arith.constant 1.000000e+00 : f32
    %58 = vector.broadcast %cst_33 : f32 to vector<8x1xf32>
    %59 = arith.divf %58, %57 : vector<8x1xf32>
    %60 = vector.broadcast %59 : vector<8x1xf32> to vector<8x16xf32>
    %61 = arith.mulf %55, %60 : vector<8x16xf32>
    %cst_34 = arith.constant dense<0.000000e+00> : vector<8x32xf32>
    %62 = tpu.matmul %61, %49, %cst_34 {dimension_numbers = #tpu.dot_dimension_numbers<[1], [0], [0], [1], [0, 0, 1, 1], [], []>} : vector<8x16xf32>, vector<16x32xf32>, vector<8x32xf32> -> vector<8x32xf32>
    %c0_35 = arith.constant 0 : index
    %c64_36 = arith.constant 64 : index
    %63 = vector.load %arg20[%c0_35, %c64_36] : memref<8x128xf32, #tpu.memory_space<vmem>>, vector<8x32xf32>
    tpu.vector_store %arg20[%c0_35, %c64_36], %62 {strides = array<i32>} : memref<8x128xf32, #tpu.memory_space<vmem>>, vector<8x32xf32>,
    %64 = vector.extract_strided_slice %12 {offsets = [0, 96], sizes = [8, 32], strides = [1, 1]} : vector<8x128xf32> to vector<8x32xf32>
    %c0_37 = arith.constant 0 : index
    %c96 = arith.constant 96 : index
    %65 = vector.load %arg18[%c0_37, %c96] : memref<16x128xf32, #tpu.memory_space<vmem>>, vector<16x32xf32>
    %c0_38 = arith.constant 0 : index
    %c96_39 = arith.constant 96 : index
    %66 = vector.load %arg19[%c0_38, %c96_39] : memref<16x128xf32, #tpu.memory_space<vmem>>, vector<16x32xf32>
    "tpu.trace_start"() <{level = 10 : i32, message = "qe,ke->qk"}> : () -> ()
    %cst_40 = arith.constant dense<0.000000e+00> : vector<8x16xf32>
    %67 = tpu.matmul %64, %65, %cst_40 {dimension_numbers = #tpu.dot_dimension_numbers<[1], [1], [0], [0], [0, 0, 1, 0], [], []>} : vector<8x32xf32>, vector<16x32xf32>, vector<8x16xf32> -> vector<8x16xf32>
    "tpu.trace_stop"() : () -> ()
    %cst_41 = arith.constant dense<0xFF800000> : vector<8xf32>
    %68 = vector.multi_reduction <maximumf>, %67, %cst_41 [1] : vector<8x16xf32> to vector<8xf32>
    %69 = vector.shape_cast %68 : vector<8xf32> to vector<8x1xf32>
    %70 = vector.broadcast %69 : vector<8x1xf32> to vector<8x16xf32>
    %71 = arith.subf %67, %70 : vector<8x16xf32>
    %72 = math.exp %71 : vector<8x16xf32>
    %cst_42 = arith.constant dense<0.000000e+00> : vector<8xf32>
    %73 = vector.multi_reduction <add>, %72, %cst_42 [1] : vector<8x16xf32> to vector<8xf32>
    %74 = vector.shape_cast %73 : vector<8xf32> to vector<8x1xf32>
    %cst_43 = arith.constant 1.000000e+00 : f32
    %75 = vector.broadcast %cst_43 : f32 to vector<8x1xf32>
    %76 = arith.divf %75, %74 : vector<8x1xf32>
    %77 = vector.broadcast %76 : vector<8x1xf32> to vector<8x16xf32>
    %78 = arith.mulf %72, %77 : vector<8x16xf32>
    %cst_44 = arith.constant dense<0.000000e+00> : vector<8x32xf32>
    %79 = tpu.matmul %78, %66, %cst_44 {dimension_numbers = #tpu.dot_dimension_numbers<[1], [0], [0], [1], [0, 0, 1, 1], [], []>} : vector<8x16xf32>, vector<16x32xf32>, vector<8x32xf32> -> vector<8x32xf32>
    %c0_45 = arith.constant 0 : index
    %c96_46 = arith.constant 96 : index
    %80 = vector.load %arg20[%c0_45, %c96_46] : memref<8x128xf32, #tpu.memory_space<vmem>>, vector<8x32xf32>
    tpu.vector_store %arg20[%c0_45, %c96_46], %79 {strides = array<i32>} : memref<8x128xf32, #tpu.memory_space<vmem>>, vector<8x32xf32>,
    %c0_47 = arith.constant 0 : index
    %c0_48 = arith.constant 0 : index
    %81 = vector.load %arg20[%c0_47, %c0_48] : memref<8x128xf32, #tpu.memory_space<vmem>>, vector<8x128xf32>
    %c0_49 = arith.constant 0 : index
    %c0_50 = arith.constant 0 : index
    %82 = vector.load %arg7[%c0_49, %c0_50] : memref<128x128xf32, #tpu.memory_space<vmem>>, vector<128x128xf32>
    %cst_51 = arith.constant dense<0.000000e+00> : vector<8x128xf32>
    %83 = tpu.matmul %81, %82, %cst_51 {dimension_numbers = #tpu.dot_dimension_numbers<[1], [0], [0], [1], [0, 0, 1, 1], [], []>} : vector<8x128xf32>, vector<128x128xf32>, vector<8x128xf32> -> vector<8x128xf32>
    %c0_52 = arith.constant 0 : index
    %c0_53 = arith.constant 0 : index
    %84 = vector.load %arg8[%c0_52, %c0_53] : memref<1x128xf32, #tpu.memory_space<vmem>>, vector<1x128xf32>
    %85 = vector.broadcast %84 : vector<1x128xf32> to vector<8x128xf32>
    %86 = arith.addf %83, %85 : vector<8x128xf32>
    %87 = arith.addf %7, %86 : vector<8x128xf32>
    %c0_54 = arith.constant 0 : index
    %c0_55 = arith.constant 0 : index
    %88 = vector.load %arg9[%c0_54, %c0_55] : memref<1x128xf32, #tpu.memory_space<vmem>>, vector<1x128xf32>
    %c0_56 = arith.constant 0 : index
    %c0_57 = arith.constant 0 : index
    %89 = vector.load %arg10[%c0_56, %c0_57] : memref<1x128xf32, #tpu.memory_space<vmem>>, vector<1x128xf32>
    %cst_58 = arith.constant dense<0.000000e+00> : vector<8xf32>
    %90 = vector.multi_reduction <add>, %87, %cst_58 [1] : vector<8x128xf32> to vector<8xf32>
    %91 = vector.shape_cast %90 : vector<8xf32> to vector<8x1xf32>
    %cst_59 = arith.constant 1.280000e+02 : f32
    %92 = vector.broadcast %cst_59 : f32 to vector<8x1xf32>
    %93 = arith.divf %91, %92 : vector<8x1xf32>
    %94 = vector.broadcast %93 : vector<8x1xf32> to vector<8x128xf32>
    %95 = arith.subf %87, %94 : vector<8x128xf32>
    %96 = arith.mulf %95, %95 : vector<8x128xf32>
    %cst_60 = arith.constant dense<0.000000e+00> : vector<8xf32>
    %97 = vector.multi_reduction <add>, %96, %cst_60 [1] : vector<8x128xf32> to vector<8xf32>
    %98 = vector.shape_cast %97 : vector<8xf32> to vector<8x1xf32>
    %cst_61 = arith.constant 1.280000e+02 : f32
    %99 = vector.broadcast %cst_61 : f32 to vector<8x1xf32>
    %100 = arith.divf %98, %99 : vector<8x1xf32>
    %101 = vector.broadcast %93 : vector<8x1xf32> to vector<8x128xf32>
    %102 = arith.subf %87, %101 : vector<8x128xf32>
    %cst_62 = arith.constant 9.99999974E-6 : f32
    %103 = vector.broadcast %cst_62 : f32 to vector<8x1xf32>
    %104 = arith.addf %100, %103 : vector<8x1xf32>
    %105 = math.rsqrt %104 : vector<8x1xf32>
    %106 = vector.broadcast %105 : vector<8x1xf32> to vector<8x128xf32>
    %107 = arith.mulf %102, %106 : vector<8x128xf32>
    %108 = vector.broadcast %88 : vector<1x128xf32> to vector<8x128xf32>
    %109 = arith.mulf %107, %108 : vector<8x128xf32>
    %110 = vector.broadcast %89 : vector<1x128xf32> to vector<8x128xf32>
    %111 = arith.addf %109, %110 : vector<8x128xf32>
    %c0_63 = arith.constant 0 : index
    %c0_64 = arith.constant 0 : index
    %112 = vector.load %arg11[%c0_63, %c0_64] : memref<128x512xf32, #tpu.memory_space<vmem>>, vector<128x512xf32>
    %cst_65 = arith.constant dense<0.000000e+00> : vector<8x512xf32>
    %113 = tpu.matmul %111, %112, %cst_65 {dimension_numbers = #tpu.dot_dimension_numbers<[1], [0], [0], [1], [0, 0, 1, 1], [], []>} : vector<8x128xf32>, vector<128x512xf32>, vector<8x512xf32> -> vector<8x512xf32>
    %c0_66 = arith.constant 0 : index
    %c0_67 = arith.constant 0 : index
    %114 = vector.load %arg12[%c0_66, %c0_67] : memref<1x512xf32, #tpu.memory_space<vmem>>, vector<1x512xf32>
    %115 = vector.broadcast %114 : vector<1x512xf32> to vector<8x512xf32>
    %116 = arith.addf %113, %115 : vector<8x512xf32>
    %cst_68 = arith.constant 0.00290283957 : f32
    %117 = vector.broadcast %cst_68 : f32 to vector<8x512xf32>
    %118 = arith.mulf %116, %117 : vector<8x512xf32>
    %cst_69 = arith.constant 2.435590e-02 : f32
    %119 = vector.broadcast %cst_69 : f32 to vector<8x512xf32>
    %120 = arith.addf %119, %118 : vector<8x512xf32>
    %121 = arith.mulf %116, %120 : vector<8x512xf32>
    %cst_70 = arith.constant 0.130227193 : f32
    %122 = vector.broadcast %cst_70 : f32 to vector<8x512xf32>
    %123 = arith.addf %122, %121 : vector<8x512xf32>
    %124 = arith.mulf %116, %123 : vector<8x512xf32>
    %cst_71 = arith.constant 0.415863633 : f32
    %125 = vector.broadcast %cst_71 : f32 to vector<8x512xf32>
    %126 = arith.addf %125, %124 : vector<8x512xf32>
    %127 = arith.mulf %116, %126 : vector<8x512xf32>
    %cst_72 = arith.constant 0.508049726 : f32
    %128 = vector.broadcast %cst_72 : f32 to vector<8x512xf32>
    %129 = arith.addf %128, %127 : vector<8x512xf32>
    %130 = arith.mulf %116, %129 : vector<8x512xf32>
    %cst_73 = arith.constant -0.0012423594 : f32
    %131 = vector.broadcast %cst_73 : f32 to vector<8x512xf32>
    %132 = arith.addf %131, %130 : vector<8x512xf32>
    %cst_74 = arith.constant 1.65616104E-10 : f32
    %133 = vector.broadcast %cst_74 : f32 to vector<8x512xf32>
    %134 = arith.mulf %116, %133 : vector<8x512xf32>
    %cst_75 = arith.constant 0.0374668278 : f32
    %135 = vector.broadcast %cst_75 : f32 to vector<8x512xf32>
    %136 = arith.addf %135, %134 : vector<8x512xf32>
    %137 = arith.mulf %116, %136 : vector<8x512xf32>
    %cst_76 = arith.constant 0.179276466 : f32
    %138 = vector.broadcast %cst_76 : f32 to vector<8x512xf32>
    %139 = arith.addf %138, %137 : vector<8x512xf32>
    %140 = arith.mulf %116, %139 : vector<8x512xf32>
    %cst_77 = arith.constant -0.0667501539 : f32
    %141 = vector.broadcast %cst_77 : f32 to vector<8x512xf32>
    %142 = arith.addf %141, %140 : vector<8x512xf32>
    %143 = arith.mulf %116, %142 : vector<8x512xf32>
    %144 = math.absf %143 : vector<8x512xf32>
    %cst_78 = arith.constant 1.000000e+00 : f32
    %145 = vector.broadcast %cst_78 : f32 to vector<8x512xf32>
    %146 = arith.addf %145, %144 : vector<8x512xf32>
    %147 = tpu.reciprocal %146 {approx = true} : vector<8x512xf32> -> vector<8x512xf32>
    %148 = arith.mulf %132, %147 : vector<8x512xf32>
    %c0_79 = arith.constant 0 : index
    %c0_80 = arith.constant 0 : index
    %149 = vector.load %arg13[%c0_79, %c0_80] : memref<512x128xf32, #tpu.memory_space<vmem>>, vector<512x128xf32>
    %cst_81 = arith.constant dense<0.000000e+00> : vector<8x128xf32>
    %150 = tpu.matmul %148, %149, %cst_81 {dimension_numbers = #tpu.dot_dimension_numbers<[1], [0], [0], [1], [0, 0, 1, 1], [], []>} : vector<8x512xf32>, vector<512x128xf32>, vector<8x128xf32> -> vector<8x128xf32>
    %c0_82 = arith.constant 0 : index
    %c0_83 = arith.constant 0 : index
    %151 = vector.load %arg14[%c0_82, %c0_83] : memref<1x128xf32, #tpu.memory_space<vmem>>, vector<1x128xf32>
    %152 = vector.broadcast %151 : vector<1x128xf32> to vector<8x128xf32>
    %153 = arith.addf %150, %152 : vector<8x128xf32>
    %154 = arith.addf %111, %153 : vector<8x128xf32>
    %c0_84 = arith.constant 0 : index
    %c0_85 = arith.constant 0 : index
    %155 = vector.load %arg15[%c0_84, %c0_85] : memref<1x128xf32, #tpu.memory_space<vmem>>, vector<1x128xf32>
    %c0_86 = arith.constant 0 : index
    %c0_87 = arith.constant 0 : index
    %156 = vector.load %arg16[%c0_86, %c0_87] : memref<1x128xf32, #tpu.memory_space<vmem>>, vector<1x128xf32>
    %cst_88 = arith.constant dense<0.000000e+00> : vector<8xf32>
    %157 = vector.multi_reduction <add>, %154, %cst_88 [1] : vector<8x128xf32> to vector<8xf32>
    %158 = vector.shape_cast %157 : vector<8xf32> to vector<8x1xf32>
    %cst_89 = arith.constant 1.280000e+02 : f32
    %159 = vector.broadcast %cst_89 : f32 to vector<8x1xf32>
    %160 = arith.divf %158, %159 : vector<8x1xf32>
    %161 = vector.broadcast %160 : vector<8x1xf32> to vector<8x128xf32>
    %162 = arith.subf %154, %161 : vector<8x128xf32>
    %163 = arith.mulf %162, %162 : vector<8x128xf32>
    %cst_90 = arith.constant dense<0.000000e+00> : vector<8xf32>
    %164 = vector.multi_reduction <add>, %163, %cst_90 [1] : vector<8x128xf32> to vector<8xf32>
    %165 = vector.shape_cast %164 : vector<8xf32> to vector<8x1xf32>
    %cst_91 = arith.constant 1.280000e+02 : f32
    %166 = vector.broadcast %cst_91 : f32 to vector<8x1xf32>
    %167 = arith.divf %165, %166 : vector<8x1xf32>
    %168 = vector.broadcast %160 : vector<8x1xf32> to vector<8x128xf32>
    %169 = arith.subf %154, %168 : vector<8x128xf32>
    %cst_92 = arith.constant 9.99999974E-6 : f32
    %170 = vector.broadcast %cst_92 : f32 to vector<8x1xf32>
    %171 = arith.addf %167, %170 : vector<8x1xf32>
    %172 = math.rsqrt %171 : vector<8x1xf32>
    %173 = vector.broadcast %172 : vector<8x1xf32> to vector<8x128xf32>
    %174 = arith.mulf %169, %173 : vector<8x128xf32>
    %175 = vector.broadcast %155 : vector<1x128xf32> to vector<8x128xf32>
    %176 = arith.mulf %174, %175 : vector<8x128xf32>
    %177 = vector.broadcast %156 : vector<1x128xf32> to vector<8x128xf32>
    %178 = arith.addf %176, %177 : vector<8x128xf32>
    %c0_93 = arith.constant 0 : index
    %c0_94 = arith.constant 0 : index
    %c0_95 = arith.constant 0 : index
    %179 = vector.load %arg17[%c0_93, %c0_94, %c0_95] : memref<1x8x128xf32, #tpu.memory_space<vmem>>, vector<1x8x128xf32>
    %180 = vector.shape_cast %179 : vector<1x8x128xf32> to vector<8x128xf32>
    %181 = vector.shape_cast %178 : vector<8x128xf32> to vector<1x8x128xf32>
    tpu.vector_store %arg17[%c0_93, %c0_94, %c0_95], %181 {strides = array<i32>} : memref<1x8x128xf32, #tpu.memory_space<vmem>>, vector<1x8x128xf32>,
    return
  }
  func.func @transform_0(%arg0: i32, %arg1: i32) -> (i32, i32, i32) {
    %c0_i32 = arith.constant 0 : i32
    %c0_i32_0 = arith.constant 0 : i32
    %c0_i32_1 = arith.constant 0 : i32
    return %arg0, %c0_i32, %c0_i32_0 : i32, i32, i32
  }
  func.func @transform_1(%arg0: i32, %arg1: i32) -> (i32, i32) {
    %c0_i32 = arith.constant 0 : i32
    %c0_i32_0 = arith.constant 0 : i32
    %c0_i32_1 = arith.constant 0 : i32
    return %c0_i32, %c0_i32_0 : i32, i32
  }
  func.func @transform_2(%arg0: i32, %arg1: i32) -> (i32, i32) {
    %c0_i32 = arith.constant 0 : i32
    %c0_i32_0 = arith.constant 0 : i32
    %c0_i32_1 = arith.constant 0 : i32
    return %c0_i32, %c0_i32_0 : i32, i32
  }
  func.func @transform_3(%arg0: i32, %arg1: i32) -> (i32, i32) {
    %c0_i32 = arith.constant 0 : i32
    %c0_i32_0 = arith.constant 0 : i32
    %c0_i32_1 = arith.constant 0 : i32
    return %c0_i32, %c0_i32_0 : i32, i32
  }
  func.func @transform_4(%arg0: i32, %arg1: i32) -> (i32, i32) {
    %c0_i32 = arith.constant 0 : i32
    %c0_i32_0 = arith.constant 0 : i32
    %c0_i32_1 = arith.constant 0 : i32
    return %c0_i32, %c0_i32_0 : i32, i32
  }
  func.func @transform_5(%arg0: i32, %arg1: i32) -> (i32, i32) {
    %c0_i32 = arith.constant 0 : i32
    %c0_i32_0 = arith.constant 0 : i32
    %c0_i32_1 = arith.constant 0 : i32
    return %c0_i32, %c0_i32_0 : i32, i32
  }
  func.func @transform_6(%arg0: i32, %arg1: i32) -> (i32, i32) {
    %c0_i32 = arith.constant 0 : i32
    %c0_i32_0 = arith.constant 0 : i32
    %c0_i32_1 = arith.constant 0 : i32
    return %c0_i32, %c0_i32_0 : i32, i32
  }
  func.func @transform_7(%arg0: i32, %arg1: i32) -> (i32, i32) {
    %c0_i32 = arith.constant 0 : i32
    %c0_i32_0 = arith.constant 0 : i32
    %c0_i32_1 = arith.constant 0 : i32
    return %c0_i32, %c0_i32_0 : i32, i32
  }
  func.func @transform_8(%arg0: i32, %arg1: i32) -> (i32, i32) {
    %c0_i32 = arith.constant 0 : i32
    %c0_i32_0 = arith.constant 0 : i32
    %c0_i32_1 = arith.constant 0 : i32
    return %c0_i32, %c0_i32_0 : i32, i32
  }
  func.func @transform_9(%arg0: i32, %arg1: i32) -> (i32, i32) {
    %c0_i32 = arith.constant 0 : i32
    %c0_i32_0 = arith.constant 0 : i32
    %c0_i32_1 = arith.constant 0 : i32
    return %c0_i32, %c0_i32_0 : i32, i32
  }
  func.func @transform_10(%arg0: i32, %arg1: i32) -> (i32, i32) {
    %c0_i32 = arith.constant 0 : i32
    %c0_i32_0 = arith.constant 0 : i32
    %c0_i32_1 = arith.constant 0 : i32
    return %c0_i32, %c0_i32_0 : i32, i32
  }
  func.func @transform_11(%arg0: i32, %arg1: i32) -> (i32, i32) {
    %c0_i32 = arith.constant 0 : i32
    %c0_i32_0 = arith.constant 0 : i32
    %c0_i32_1 = arith.constant 0 : i32
    return %c0_i32, %c0_i32_0 : i32, i32
  }
  func.func @transform_12(%arg0: i32, %arg1: i32) -> (i32, i32) {
    %c0_i32 = arith.constant 0 : i32
    %c0_i32_0 = arith.constant 0 : i32
    %c0_i32_1 = arith.constant 0 : i32
    return %c0_i32, %c0_i32_0 : i32, i32
  }
  func.func @transform_13(%arg0: i32, %arg1: i32) -> (i32, i32) {
    %c0_i32 = arith.constant 0 : i32
    %c0_i32_0 = arith.constant 0 : i32
    %c0_i32_1 = arith.constant 0 : i32
    return %c0_i32, %c0_i32_0 : i32, i32
  }
  func.func @transform_14(%arg0: i32, %arg1: i32) -> (i32, i32) {
    %c0_i32 = arith.constant 0 : i32
    %c0_i32_0 = arith.constant 0 : i32
    %c0_i32_1 = arith.constant 0 : i32
    return %c0_i32, %c0_i32_0 : i32, i32
  }
  func.func @transform_15(%arg0: i32, %arg1: i32) -> (i32, i32, i32) {
    %c0_i32 = arith.constant 0 : i32
    %c0_i32_0 = arith.constant 0 : i32
    return %arg0, %arg1, %c0_i32 : i32, i32, i32
  }
}

</mosaic_0001>

<bundles_post_ra>
// kernel: tpu_custom_call.1
= control target key start
LH: loop header
LB: loop body
LE: loop exit
PB: predicated region body
PF: predicated region fallthrough
CT: control target
= control target key end

     0   :  { %s4165_s0 = inlined_call_operand.hbm [shape: f32[2,16,128], index: 0, kind: input, shape index: {}]   ;;  %s4166_s1 = inlined_call_operand.hbm [shape: f32[128,128], index: 1, kind: input, shape index: {}]   ;;  %s4167_s2 = inlined_call_operand.vmem [shape: f32[1,128], index: 2, kind: input, shape index: {}]   ;;  %s4168_s3 = inlined_call_operand.hbm [shape: f32[128,256], index: 3, kind: input, shape index: {}]   ;;  %s4169_s4 = inlined_call_operand.vmem [shape: f32[1,256], index: 4, kind: input, shape index: {}]   ;;  %s4170_s5 = inlined_call_operand.hbm [shape: f32[128,128], index: 5, kind: input, shape index: {}]   ;;  %s4171_s6 = inlined_call_operand.vmem [shape: f32[1,128], index: 6, kind: input, shape index: {}]   ;;  %s4172_s7 = inlined_call_operand.vmem [shape: f32[1,128], index: 7, kind: input, shape index: {}]   ;;  %s4173_s8 = inlined_call_operand.vmem [shape: f32[1,128], index: 8, kind: input, shape index: {}]   ;;  %s4174_s9 = inlined_call_operand.hbm [shape: f32[128,512], index: 9, kind: input, shape index: {}]   ;;  %s4175_s10 = inlined_call_operand.vmem [shape: f32[1,512], index: 10, kind: input, shape index: {}]   ;;  %s4176_s11 = inlined_call_operand.hbm [shape: f32[512,128], index: 11, kind: input, shape index: {}]   ;;  %s4177_s12 = inlined_call_operand.vmem [shape: f32[1,128], index: 12, kind: input, shape index: {}]   ;;  %s4178_s13 = inlined_call_operand.vmem [shape: f32[1,128], index: 13, kind: input, shape index: {}]   ;;  %s4179_s14 = inlined_call_operand.vmem [shape: f32[1,128], index: 14, kind: input, shape index: {}]   ;;  %s4180_s15 = inlined_call_operand.hbm [shape: f32[2,16,128], index: 15, kind: output, shape index: {}]  }
   0x1   :  { %4196 = sst [smem:[#allocation27_spill]] %s4165_s0 }
   0x2   :  { %4197 = sst [smem:[#allocation28_spill]] %s4166_s1 }
   0x3   :  { %4198 = sst [smem:[#allocation29_spill]] %s4167_s2 }
   0x4   :  { %4199 = sst [smem:[#allocation30_spill]] %s4168_s3 }
   0x5   :  { %4200 = sst [smem:[#allocation31_spill]] %s4169_s4 }
   0x6   :  { %4201 = sst [smem:[#allocation32_spill]] %s4170_s5 }
   0x7   :  { %4202 = sst [smem:[#allocation33_spill]] %s4171_s6 }
   0x8   :  { %4203 = sst [smem:[#allocation34_spill]] %s4172_s7 }
   0x9   :  { %4204 = sst [smem:[#allocation35_spill]] %s4173_s8 }
   0xa   :  { %4205 = sst [smem:[#allocation36_spill]] %s4174_s9 }
   0xb   :  { %4206 = sst [smem:[#allocation37_spill]] %s4175_s10 }
   0xc   :  { %4207 = sst [smem:[#allocation38_spill]] %s4176_s11 }
   0xd   :  { %4208 = sst [smem:[#allocation39_spill]] %s4177_s12 }
   0xe   :  { %4209 = sst [smem:[#allocation40_spill]] %s4178_s13 }
   0xf   :  { %4210 = sst [smem:[#allocation41_spill]] %s4179_s14 }
  0x10   :  { %4211 = sst [smem:[#allocation42_spill]] %s4180_s15 }
  0x11   :  { %20 = vsyncpa [#allocation6], 0 }
  0x12   :  { %22 = vsyncpa [#allocation6 + $0x1], 0 }
  0x13   :  { %23 = vsyncpa [#allocation9], 0 }
  0x14   :  { %24 = vsyncpa [#allocation12], 0 }
  0x15   :  { %25 = vsyncpa [#allocation15], 0 }
  0x16   :  { %26 = vsyncpa [#allocation7], 0 }
  0x17   :  { %28 = vsyncpa [#allocation7 + $0x1], 0  ;;  %s3570_s18 = smov 0   ;;  %s3572_s19 = smov 0  }
  0x18   :  { %s3574_s20 = smov 0   ;;  %s3576_s21 = smov 0  }
  0x19   :  { %s3578_s22 = smov 0   ;;  %s3580_s23 = smov 0  }
  0x1a   :  { %s3582_s24 = smov 0   ;;  %s3584_s25 = smov 0  }
  0x1b   :  { %s3586_s26 = smov 0   ;;  %s3588_s27 = smov 0  }
  0x1c   :  { %s3590_s28 = smov 0  }
  0x1d LB: > { %4212 = sst [smem:[#allocation22_spill]] %s3452_s24  ;;  %s2383_s29 = sadd.s32 4294967295, %s3468_s28   ;;  %s3468_s28 = sphi %s3590_s28, %s34_s28   ;;  %s3464_s27 = sphi %s3588_s27, %s4269_s27   ;;  %s3460_s26 = sphi %s3586_s26, %s4268_s26   ;;  %s3456_s25 = sphi %s3584_s25, %s4267_s25   ;;  %s3452_s24 = sphi %s3582_s24, %s4266_s24   ;;  %s3448_s23 = sphi %s3580_s23, %s4265_s23   ;;  %s3444_s22 = sphi %s3578_s22, %s4264_s22   ;;  %s3440_s21 = sphi %s3576_s21, %s4263_s21   ;;  %s3436_s20 = sphi %s3574_s20, %s4262_s20   ;;  %s3432_s19 = sphi %s3572_s19, %s4261_s19   ;;  %s3428_s18 = sphi %s3570_s18, %s4260_s18  }
  0x1e   : > { %4213 = sst [smem:[#allocation23_spill]] %s3456_s25  ;;  %p2385_p0 = scmp.ge.s32.totalorder %s3468_s28, 1 }
  0x1f   : > { %p3627_p1 = scmp.eq.s32.totalorder %s2383_s29, 0  ;;  %p3631_p2 = scmp.eq.s32.totalorder %s2383_s29, 3 }
  0x20   : > { %p399_p3 = scmp.lt.s32.totalorder %s3468_s28, 5  ;;  %s3470_s15 = smov [#allocation8]  }
  0x21   : > { %s4214_s30 = scalar_select %p3627_p1, 1, 0 }
  0x22   : > { %s4215_s16 = scalar_select %p3631_p2, 1, 0 }
  0x23   : > { %p3636_p4 = pnand %p2385_p0, %p399_p3  ;;  %s411_s14 = sshll.u32 %s3470_s15, 4  ;;  %s3640_s14 = int_to_ptr.vmem [resolvable:$true] %s411_s14 }
  0x24   : > { %4216 = sst [smem:[#allocation24_spill]] %s4215_s16  ;;  %s3471_s29 = smov [#allocation11]  }
  0x25   : > { %s4217_s17 = scalar_select %p3636_p4, 1, 0 }
  0x26   : > { %p2964_p5 = pneg %p3636_p4  ;;  %s443_s25 = sshll.u32 %s3471_s29, 4  ;;  %s3650_s25 = int_to_ptr.vmem [resolvable:$true] %s443_s25 }
  0x27   : > { %4218 = sst [smem:[#allocation25_spill]] %s4217_s17  ;;  %s3472_s12 = smov [#allocation10]  }
  0x28   : > { %p3646_p6 = pnand %p2964_p5, %p3627_p1  ;;  %s427_s10 = sshll.u32 %s3472_s12, 4  ;;  %s3652_s10 = int_to_ptr.vmem [resolvable:$true] %s427_s10 }
  0x29   : > { %s4220_s1 = sld [smem:[#allocation28_spill]] }
  0x2a   : > { %p3662_p8 = pneg %p3646_p6 }
  0x2f   : > { %s3164_s7 = scalar_lea.hbm %s4220_s1, 2048 }
  0x30   : > { %p3165_p7 = scmp.ne.s32.totalorder %s4220_s1, %s3164_s7  ;;  %p3171_p11 = scmp.lt.u32.totalorder %s3164_s7, %s4220_s1 }
  0x32   : > { %p3167_p9 = pnand %p3662_p8, %p3165_p7 }
  0x34   : > { %p3168_p10 = pneg %p3167_p9 }
  0x36   : > { %p3173_p12 = pnand %p3171_p11, %p3168_p10 }
  0x38   : > { %3176 = shalt.err (!%p3173_p12)
}
  0x39   : > { %s3177_s2 = scalar_lea.vmem %s3640_s14, 2048  ;;  %p3185_p5 = scmp.lt.s32.totalorder %s3640_s14, %s3640_s14 }
  0x3a   : > { %p3178_p13 = scmp.ne.s32.totalorder %s3640_s14, %s3177_s2  ;;  %p3186_p4 = scmp.lt.s32.totalorder %s3177_s2, %s3177_s2 }
  0x3c   : > { %p3180_p0 = pnand %p3178_p13, %p3662_p8  ;;  %p3187_p7 = por %p3186_p4, %p3185_p5 }
  0x3e   : > { %p3181_p3 = pneg %p3180_p0 }
  0x40   : > { %p3188_p9 = pnand %p3187_p7, %p3181_p3 }
  0x42   : > { %3191 = shalt.err (!%p3188_p9)
}
  0x43   : > { %s4187_s6 = smov 128   ;;  %s4189_s7 = smov 8  }
  0x44   : > { %2967 = dma.hbm_to_vmem [thread:$0]  (!%p3646_p6), %s4220_s1, 2048, %s3640_s14, [#allocation9], %s4187_s6, %s4187_s6, %s4189_s7  }
  0x45   : > { %s4222_s5 = sld [smem:[#allocation32_spill]] }
  0x4b   : > { %s3192_s2 = scalar_lea.hbm %s4222_s5, 2048 }
  0x4c   : > { %p3193_p4 = scmp.ne.s32.totalorder %s4222_s5, %s3192_s2  ;;  %p3199_p12 = scmp.lt.u32.totalorder %s3192_s2, %s4222_s5 }
  0x4e   : > { %p3195_p10 = pnand %p3193_p4, %p3662_p8 }
  0x50   : > { %p3196_p11 = pneg %p3195_p10 }
  0x52   : > { %p3201_p13 = pnand %p3199_p12, %p3196_p11 }
  0x54   : > { %3204 = shalt.err (!%p3201_p13)
}
  0x55   : > { %s3205_s14 = scalar_lea.vmem %s3650_s25, 2048  ;;  %p3213_p7 = scmp.lt.s32.totalorder %s3650_s25, %s3650_s25 }
  0x56   : > { %p3206_p0 = scmp.ne.s32.totalorder %s3650_s25, %s3205_s14  ;;  %p3214_p9 = scmp.lt.s32.totalorder %s3205_s14, %s3205_s14 }
  0x58   : > { %p3208_p3 = pnand %p3206_p0, %p3662_p8  ;;  %p3215_p4 = por %p3214_p9, %p3213_p7 }
  0x5a   : > { %p3209_p5 = pneg %p3208_p3 }
  0x5c   : > { %p3216_p10 = pnand %p3215_p4, %p3209_p5 }
  0x5e   : > { %3219 = shalt.err (!%p3216_p10)
}
  0x5f   : > { %2973 = dma.hbm_to_vmem [thread:$0]  (!%p3646_p6), %s4222_s5, 2048, %s3650_s25, [#allocation12], %s4187_s6, %s4187_s6, %s4189_s7  }
  0x60   : > { %s4223_s3 = sld [smem:[#allocation30_spill]] }
  0x66   : > { %s3220_s8 = scalar_lea.hbm %s4223_s3, 4096 }
  0x67   : > { %p3221_p11 = scmp.ne.s32.totalorder %s4223_s3, %s3220_s8  ;;  %p3227_p0 = scmp.lt.u32.totalorder %s3220_s8, %s4223_s3 }
  0x69   : > { %p3223_p12 = pnand %p3221_p11, %p3662_p8 }
  0x6b   : > { %p3224_p13 = pneg %p3223_p12 }
  0x6d   : > { %p3229_p3 = pnand %p3227_p0, %p3224_p13 }
  0x6f   : > { %3232 = shalt.err (!%p3229_p3)
}
  0x70   : > { %s3233_s25 = scalar_lea.vmem %s3652_s10, 4096  ;;  %p3241_p4 = scmp.lt.s32.totalorder %s3652_s10, %s3652_s10 }
  0x71   : > { %p3234_p5 = scmp.ne.s32.totalorder %s3652_s10, %s3233_s25  ;;  %p3242_p10 = scmp.lt.s32.totalorder %s3233_s25, %s3233_s25 }
  0x73   : > { %p3236_p7 = pnand %p3234_p5, %p3662_p8  ;;  %p3243_p11 = por %p3242_p10, %p3241_p4 }
  0x75   : > { %p3237_p9 = pneg %p3236_p7 }
  0x77   : > { %p3244_p12 = pnand %p3243_p11, %p3237_p9 }
  0x79   : > { %3247 = shalt.err (!%p3244_p12)
}
  0x7a   : > { %s3475_s14 = smov 256   ;;  %s3476_s0 = smov 16  }
  0x7b   : > { %2970 = dma.hbm_to_vmem [thread:$0]  (!%p3646_p6), %s4223_s3, 4096, %s3652_s10, [#allocation9], %s3475_s14, %s3475_s14, %s3476_s0  }
  0x7c   : > { %s3477_s17 = smov [#allocation13]   ;;  %s4224_s9 = sld [smem:[#allocation36_spill]] }
  0x7d   : > { %s465_s8 = sshll.u32 %s3477_s17, 4  ;;  %s466_s8 = int_to_ptr.vmem [resolvable:$true] %s465_s8 }
  0x82   : > { %s3248_s29 = scalar_lea.hbm %s4224_s9, 8192 }
  0x83   : > { %p3249_p13 = scmp.ne.s32.totalorder %s4224_s9, %s3248_s29  ;;  %p3255_p5 = scmp.lt.u32.totalorder %s3248_s29, %s4224_s9 }
  0x85   : > { %p3251_p0 = pnand %p3249_p13, %p3662_p8 }
  0x87   : > { %p3252_p3 = pneg %p3251_p0 }
  0x89   : > { %p3257_p7 = pnand %p3255_p5, %p3252_p3 }
  0x8b   : > { %3260 = shalt.err (!%p3257_p7)
}
  0x8c   : > { %s3261_s10 = scalar_lea.vmem %s466_s8, 8192  ;;  %p3269_p11 = scmp.lt.s32.totalorder %s466_s8, %s466_s8 }
  0x8d   : > { %p3262_p9 = scmp.ne.s32.totalorder %s466_s8, %s3261_s10  ;;  %p3270_p12 = scmp.lt.s32.totalorder %s3261_s10, %s3261_s10 }
  0x8f   : > { %p3264_p4 = pnand %p3262_p9, %p3662_p8  ;;  %p3271_p2 = por %p3270_p12, %p3269_p11 }
  0x91   : > { %p3265_p10 = pneg %p3264_p4 }
  0x93   : > { %p3272_p1 = pnand %p3271_p2, %p3265_p10 }
  0x95   : > { %3275 = shalt.err (!%p3272_p1)
}
  0x96   : > { %s3478_s14 = smov 512   ;;  %s3479_s0 = smov 32  }
  0x97   : > { %2976 = dma.hbm_to_vmem [thread:$0]  (!%p3646_p6), %s4224_s9, 8192, %s466_s8, [#allocation12], %s3478_s14, %s3478_s14, %s3479_s0  }
  0x98   : > { %s3480_s24 = smov [#allocation14]   ;;  %s4225_s11 = sld [smem:[#allocation38_spill]] }
  0x99   : > { %s481_s16 = sshll.u32 %s3480_s24, 4  ;;  %s482_s16 = int_to_ptr.vmem [resolvable:$true] %s481_s16 }
  0x9e   : > { %s3276_s12 = scalar_lea.hbm %s4225_s11, 8192 }
  0x9f   : > { %p3277_p1 = scmp.ne.s32.totalorder %s4225_s11, %s3276_s12  ;;  %p3283_p0 = scmp.lt.u32.totalorder %s3276_s12, %s4225_s11 }
  0xa1   : > { %p3279_p2 = pnand %p3277_p1, %p3662_p8 }
  0xa3   : > { %p3280_p13 = pneg %p3279_p2 }
  0xa5   : > { %p3285_p3 = pnand %p3283_p0, %p3280_p13 }
  0xa7   : > { %3288 = shalt.err (!%p3285_p3)
}
  0xa8   : > { %s3289_s8 = scalar_lea.vmem %s482_s16, 8192  ;;  %p3297_p4 = scmp.lt.s32.totalorder %s482_s16, %s482_s16 }
  0xa9   : > { %p3290_p5 = scmp.ne.s32.totalorder %s482_s16, %s3289_s8  ;;  %p3298_p10 = scmp.lt.s32.totalorder %s3289_s8, %s3289_s8 }
  0xab   : > { %p3292_p7 = pnand %p3290_p5, %p3662_p8  ;;  %p3299_p11 = por %p3298_p10, %p3297_p4 }
  0xad   : > { %p3293_p9 = pneg %p3292_p7 }
  0xaf   : > { %p3300_p12 = pnand %p3299_p11, %p3293_p9 }
  0xb1   : > { %3303 = shalt.err (!%p3300_p12)
}
  0xb2   : > { %s4226_s14 = smov 8   ;;  %s4227_s0 = smov 128  }
  0xb3   : > { %2979 = dma.hbm_to_vmem [thread:$0]  (!%p3646_p6), %s4225_s11, 8192, %s482_s16, [#allocation15], %s4227_s0, %s4227_s0, %s4226_s14  }
  0xb4   : > { %s2384_s4 = sadd.s32 4294967294, %s3468_s28   ;;  %s43_s13 = sadd.s32 1, %s3460_s26 }
  0xb5   : > { %p44_p8 = scmp.ge.s32.totalorder %s43_s13, 2  ;;  %s46_s24 = sadd.s32 1, %s3464_s27 }
  0xb6   : > { %s53_s17 = sadd.s32 1, %s3448_s23  ;;  %p60_p1 = scmp.ne.s32.totalorder %s3448_s23, %s3444_s22 }
  0xb7   : > { %s4271_s13 = smov (%p44_p8, %s43_s13), 0  ;;  %s4228_s15 = sld [smem:[#allocation24_spill]] }
  0xb8   : > { %s4273_s24 = smov (!%p44_p8, %s46_s24), %s3464_s27  ;;  %p61_p2 = scmp.eq.s32.totalorder %s3468_s28, 0 }
  0xb9   : > { %p66_p6 = scmp.ne.s32.totalorder %s3444_s22, %s3440_s21  ;;  %p48_p13 = scmp.ge.s32.totalorder %s4273_s24, 2 }
  0xba   : > { %s371_s16 = ssub.s32 %s3460_s26, %s4271_s13  ;;  %p3788_p0 = por %p61_p2, %p60_p1 }
  0xbb   : > { %p4230_p3 = scmp.ne.s32.totalorder %s4214_s30, 0  ;;  %s4275_s24 = smov (%p48_p13, %s4273_s24), 0 }
  0xbc   : > { %4232 = sst [smem:[#allocation26_spill]] %s4275_s24  ;;  %s375_s2 = sadd.s32 1, %s3436_s20 }
  0xbd   : > { %p3794_p5 = por %p4230_p3, %p66_p6  ;;  %p385_p7 = scmp.ne.s32.totalorder %s3436_s20, %s3432_s19 }
  0xbe   : > { %s50_s21 = ssub.s32 %s3464_s27, %s4275_s24  ;;  %p391_p9 = scmp.ne.s32.totalorder %s3432_s19, %s3428_s18 }
  0xbf   : > { %p51_p4 = scmp.eq.s32.totalorder %s50_s21, 0  ;;  %s372_s25 = sor.u32 %s371_s16, %s50_s21 }
  0xc0   : > { %p373_p10 = scmp.eq.s32.totalorder %s372_s25, 0  ;;  %p4233_p11 = scmp.ne.s32.totalorder %s4228_s15, 0 }
  0xc1   : > { %s3814_s8 = scalar_select %p51_p4, %s3448_s23, %s53_s17  }
  0xc2   : > { %p3809_p12 = por %p4233_p11, %p385_p7  ;;  %p392_p8 = scmp.eq.s32.totalorder %s2384_s4, 3 }
  0xc3   : > { %s3817_s6 = scalar_select %p373_p10, %s3436_s20, %s375_s2  }
  0xc4   : > { %s4234_s10 = scalar_select %p3809_p12, 1, 0 }
  0xc5   : > { %p2993_p1 = scmp.lt.s32.totalorder %s3468_s28, 4  ;;  %s504_s7 = sand.u32 1, %s3448_s23  }
  0xc6   : > { %s2433_s1 = sshll.u32 %s3464_s27, 8  ;;  %p3822_p2 = por %p392_p8, %p391_p9 }
  0xc7   : > { %s2392_s5 = sshll.u32 %s504_s7, 4  ;;  %s4236_s15 = sld [smem:[#allocation27_spill]] }
  0xc8   : > { %s4235_s3 = scalar_select %p3822_p2, 1, 0 }
  0xc9   : > { %p3833_p6 = pnand %p2993_p1, %p3788_p0  ;;  %s508_s17 = scalar_lea.vmem [#allocation5], %s2392_s5 }
  0xca   : > { %s515_s2 = sshll.u32 %s508_s17, 4  ;;  %s3839_s9 = scalar_lea.sflag [#allocation6], %s504_s7  ;;  %s3837_s2 = int_to_ptr.vmem [resolvable:$true] %s515_s2 }
  0xcb   : > { %p3306_p3 = pneg %p3833_p6 }
  0xcd   : > { %s3829_s25 = scalar_lea.hbm %s4236_s15, %s2433_s1  ;;  %s3309_s21 = scalar_lea.hbm %s4236_s15, 512 }
  0xce   : > { %s3304_s16 = scalar_lea.hbm %s3829_s25, 256  ;;  %p3310_p0 = scmp.lt.u32.totalorder %s3829_s25, %s4236_s15 }
  0xcf   : > { %p3305_p13 = scmp.ne.s32.totalorder %s3829_s25, %s3304_s16  ;;  %p3311_p4 = scmp.lt.u32.totalorder %s3309_s21, %s3304_s16 }
  0xd0   : > { %p3313_p11 = scmp.lt.u32.totalorder %s3304_s16, %s3829_s25 }
  0xd1   : > { %p3307_p7 = pnand %p3306_p3, %p3305_p13  ;;  %p3312_p10 = por %p3311_p4, %p3310_p0 }
  0xd3   : > { %p3308_p9 = pneg %p3307_p7  ;;  %p3314_p8 = por %p3313_p11, %p3312_p10 }
  0xd5   : > { %p3315_p1 = pnand %p3314_p8, %p3308_p9 }
  0xd7   : > { %3318 = shalt.err (!%p3315_p1)
}
  0xd8   : > { %s3319_s5 = scalar_lea.vmem %s3837_s2, 256  ;;  %s3481_s7 = smov [#allocation5]  }
  0xd9   : > { %p3320_p13 = scmp.ne.s32.totalorder %s3837_s2, %s3319_s5  ;;  %s3324_s17 = sshll.u32 %s3481_s7, 4  ;;  %s3325_s17 = int_to_ptr.vmem [resolvable:$false] %s3324_s17 }
  0xda   : > { %s3326_s11 = scalar_lea.vmem %s3325_s17, 512  ;;  %p3327_p12 = scmp.lt.s32.totalorder %s3837_s2, %s3325_s17 }
  0xdb   : > { %p3322_p7 = pnand %p3320_p13, %p3306_p3  ;;  %p3328_p0 = scmp.lt.s32.totalorder %s3326_s11, %s3319_s5 }
  0xdd   : > { %p3323_p2 = pneg %p3322_p7  ;;  %p3329_p4 = por %p3328_p0, %p3327_p12 }
  0xdf   : > { %p3330_p10 = pnand %p3329_p4, %p3323_p2 }
  0xe1   : > { %3333 = shalt.err (!%p3330_p10)
}
  0xe2   : > { %2983 = dma.hbm_to_vmem [thread:$0]  (!%p3833_p6), %s3829_s25, 256, %s3837_s2, %s3839_s9, %s4227_s0, %s4227_s0, %s4226_s14  }
  0xe3   : > { %s4238_s24 = sld [smem:[#allocation25_spill]] }
  0xe9   : > { %p4239_p3 = scmp.ne.s32.totalorder %s4238_s24, 0 }
  0xea   : > { %s529_s16 = sand.u32 (!%p4239_p3), 1, %s3444_s22  }
  0xeb   : > { %527 = sbr.rel (%p4239_p3) target bundleno = 4541 (0x11bd), region = 80  ;;  %s2396_s1 = sshll.u32 (!%p4239_p3), %s529_s16, 4 }
  0xec   : > { %s530_s12 = scalar_lea.sflag (!%p4239_p3), [#allocation6], %s529_s16  ;;  %s3873_s21 = scalar_lea.vmem (!%p4239_p3), [#allocation5], %s2396_s1 }
  0xf2   : > { %3407 = dma.done.wait (%p3794_p5), %s530_s12, 256  }
  0xf3   : > { %3409 = vsyncadd (%p3794_p5), %s530_s12, 4294967040  ;;  %p4240_p12 = scmp.ne.s32.totalorder %s4214_s30, 0 }
  0xf5   : > { %3411 = dma.done.wait (%p4240_p12), [#allocation9], 6144  }
  0xf6   : > { %3413 = vsyncadd (%p4240_p12), [#allocation9], 4294961152 }
  0xf7   : > { %3415 = dma.done.wait (%p4240_p12), [#allocation12], 10240  }
  0xf8   : > { %3417 = vsyncadd (%p4240_p12), [#allocation12], 4294957056 }
  0xf9   : > { %3419 = dma.done.wait (%p4240_p12), [#allocation15], 8192  }
  0xfa   : > { %3421 = vsyncadd (%p4240_p12), [#allocation15], 4294959104  ;;  %s4195_s9 = sand.u32 1, %s3432_s19   ;;  %s4241_s29 = sld [smem:[#allocation22_spill]] }
  0xfb   : > { %s3894_s14 = sshll.u32 %s4195_s9, 3 }
  0xfc   : > { %s599_s0 = scalar_lea.vmem [#allocation16], %s3894_s14 }
 0x100   : > { %p2403_p5 = scmp.ne.s32.totalorder %s4241_s29, 0 }
 0x101   : > { %v607_v0 = vld [vmem:[#allocation10 + $0x8] sm:$0xff] (!%p2403_p5)  ;;  %v609_v1 = vld [vmem:[#allocation10 + $0x18] sm:$0xff] (!%p2403_p5)  ;;  %v606_v2 = vld [vmem:[#allocation10] sm:$0xff] (!%p2403_p5)  ;;  %v3482_v7 = vmov (!%p2403_p5), 0.0   ;;  %v640_v51 = vlaneseq (!%p2403_p5)  ;;  %s4242_s4 = sld [smem:[#allocation31_spill]] (!%p2403_p5) }
 0x102   : > { %603 = sbr.rel (%p2403_p5) target bundleno = 508 (0x1fc), region = 108  ;;  %v2688_v3 = vpack.c.bf16 (!%p2403_p5), %v609_v1, %v607_v0  ;;  %v608_v4 = vld [vmem:[#allocation10 + $0x10] sm:$0xff] (!%p2403_p5)  ;;  %v611_v5 = vld [vmem:[#allocation10 + $0x28] sm:$0xff] (!%p2403_p5)  ;;  %v613_v6 = vld [vmem:[#allocation10 + $0x38] sm:$0xff] (!%p2403_p5)  ;;  %714 = vmatprep.mubr.f32.mxu0 (!%p2403_p5), %v3482_v7  ;;  %720 = vmatprep.mubr.f32.mxu1 (!%p2403_p5), %v3482_v7 }
 0x103   : > { %v2690_v8 = vpack.c.bf16 (!%p2403_p5), %v608_v4, %v606_v2  ;;  %v2692_v9 = vpack.c.bf16 (!%p2403_p5), %v613_v6, %v611_v5  ;;  %v610_v10 = vld [vmem:[#allocation10 + $0x20] sm:$0xff] (!%p2403_p5)  ;;  %v612_v11 = vld [vmem:[#allocation10 + $0x30] sm:$0xff] (!%p2403_p5)  ;;  %v615_v12 = vld [vmem:[#allocation10 + $0x48] sm:$0xff] (!%p2403_p5)  ;;  %v641_v52 = vshrl.u32 (!%p2403_p5), %v640_v51, 7 }
 0x104   : > { %2689 = vmatprep.subr.bf16.mxu0 (!%p2403_p5), %v2688_v3  ;;  %2924 = vmatprep.subr.bf16.mxu1 (!%p2403_p5), %v2688_v3  ;;  %v617_v13 = vld [vmem:[#allocation10 + $0x58] sm:$0xff] (!%p2403_p5)  ;;  %v2694_v14 = vpack.c.bf16 (!%p2403_p5), %v612_v11, %v610_v10  ;;  %v614_v16 = vld [vmem:[#allocation10 + $0x40] sm:$0xff] (!%p2403_p5)  ;;  %v616_v17 = vld [vmem:[#allocation10 + $0x50] sm:$0xff] (!%p2403_p5) }
 0x105   : > { %2691 = vmatpush1.bf16.msra.mxu0 (!%p2403_p5), %v2690_v8  ;;  %2932 = vmatpush1.bf16.msra.mxu1 (!%p2403_p5), %v2690_v8  ;;  %v2696_v15 = vpack.c.bf16 (!%p2403_p5), %v617_v13, %v615_v12  ;;  %v619_v18 = vld [vmem:[#allocation10 + $0x68] sm:$0xff] (!%p2403_p5)  ;;  %v621_v19 = vld [vmem:[#allocation10 + $0x78] sm:$0xff] (!%p2403_p5)  ;;  %v2698_v20 = vpack.c.bf16 (!%p2403_p5), %v616_v17, %v614_v16  ;;  %v618_v22 = vld [vmem:[#allocation10 + $0x60] sm:$0xff] (!%p2403_p5)  ;;  %v642_v53 = vsub.s32 (!%p2403_p5), 0, %v641_v52  ;;  %v646_v55 = vsub.s32 (!%p2403_p5), 1, %v641_v52 }
 0x106   : > { %2693 = vmatprep.subr.bf16.mxu0 (!%p2403_p5), %v2692_v9  ;;  %2925 = vmatprep.subr.bf16.mxu1 (!%p2403_p5), %v2692_v9  ;;  %v2700_v21 = vpack.c.bf16 (!%p2403_p5), %v621_v19, %v619_v18  ;;  %v620_v23 = vld [vmem:[#allocation10 + $0x70] sm:$0xff] (!%p2403_p5)  ;;  %v623_v24 = vld [vmem:[#allocation10 + $0x88] sm:$0xff] (!%p2403_p5)  ;;  %v625_v25 = vld [vmem:[#allocation10 + $0x98] sm:$0xff] (!%p2403_p5) }
 0x107   : > { %v2702_v26 = vpack.c.bf16 (!%p2403_p5), %v620_v23, %v618_v22  ;;  %v2704_v27 = vpack.c.bf16 (!%p2403_p5), %v625_v25, %v623_v24  ;;  %v622_v28 = vld [vmem:[#allocation10 + $0x80] sm:$0xff] (!%p2403_p5)  ;;  %v624_v29 = vld [vmem:[#allocation10 + $0x90] sm:$0xff] (!%p2403_p5)  ;;  %v627_v30 = vld [vmem:[#allocation10 + $0xa8] sm:$0xff] (!%p2403_p5) }
 0x108   : > { %v629_v31 = vld [vmem:[#allocation10 + $0xb8] sm:$0xff] (!%p2403_p5)  ;;  %v2706_v32 = vpack.c.bf16 (!%p2403_p5), %v624_v29, %v622_v28  ;;  %v626_v34 = vld [vmem:[#allocation10 + $0xa0] sm:$0xff] (!%p2403_p5)  ;;  %v628_v35 = vld [vmem:[#allocation10 + $0xb0] sm:$0xff] (!%p2403_p5) }
 0x109   : > { %2695 = vmatpush1.bf16.msra.mxu0 %v2694_v14  ;;  %2933 = vmatpush1.bf16.msra.mxu1 %v2694_v14  ;;  %v2708_v33 = vpack.c.bf16 %v629_v31, %v627_v30  ;;  %v631_v36 = vld [vmem:[#allocation10 + $0xc8] sm:$0xff]  ;;  %v633_v37 = vld [vmem:[#allocation10 + $0xd8] sm:$0xff]  ;;  %v2710_v38 = vpack.c.bf16 %v628_v35, %v626_v34  ;;  %v630_v40 = vld [vmem:[#allocation10 + $0xc0] sm:$0xff] }
 0x10a   : > { %2697 = vmatprep.subr.bf16.mxu0 %v2696_v15  ;;  %2926 = vmatprep.subr.bf16.mxu1 %v2696_v15  ;;  %v2712_v39 = vpack.c.bf16 %v633_v37, %v631_v36  ;;  %v632_v41 = vld [vmem:[#allocation10 + $0xd0] sm:$0xff]  ;;  %v635_v42 = vld [vmem:[#allocation10 + $0xe8] sm:$0xff]  ;;  %v637_v43 = vld [vmem:[#allocation10 + $0xf8] sm:$0xff] }
 0x10b   : > { %v2714_v44 = vpack.c.bf16 %v632_v41, %v630_v40  ;;  %v2716_v45 = vpack.c.bf16 %v637_v43, %v635_v42  ;;  %v634_v46 = vld [vmem:[#allocation10 + $0xe0] sm:$0xff]  ;;  %v636_v47 = vld [vmem:[#allocation10 + $0xf0] sm:$0xff]  ;;  %v605_v50 = vld [vmem:[%s3873_s21 + $0x8] sm:$0xff] }
 0x10c   : > { %v2718_v48 = vpack.c.bf16 %v636_v47, %v634_v46  ;;  %v604_v49 = vld [vmem:[%s3873_s21] sm:$0xff]  ;;  %v638_v54 = vld [vmem:[%s4242_s4] sm:$0x3] }
 0x10d   : > { %2699 = vmatpush1.bf16.msra.mxu0 %v2698_v20  ;;  %2934 = vmatpush1.bf16.msra.mxu1 %v2698_v20  ;;  %v643_v56 = vrot.slane %v638_v54, %v642_v53  ;;  %v647_v57 = vrot.slane %v638_v54, %v646_v55 }
 0x10e   : > { %2701 = vmatprep.subr.bf16.mxu0 %v2700_v21  ;;  %2927 = vmatprep.subr.bf16.mxu1 %v2700_v21 }
 0x111   : > { %2703 = vmatpush1.bf16.msra.mxu0 %v2702_v26  ;;  %2935 = vmatpush1.bf16.msra.mxu1 %v2702_v26 }
 0x112   : > { %2705 = vmatprep.subr.bf16.mxu0 %v2704_v27  ;;  %2928 = vmatprep.subr.bf16.mxu1 %v2704_v27 }
 0x115   : > { %2707 = vmatpush1.bf16.msra.mxu0 %v2706_v32  ;;  %2936 = vmatpush1.bf16.msra.mxu1 %v2706_v32 }
 0x116   : > { %2709 = vmatprep.subr.bf16.mxu0 %v2708_v33  ;;  %2929 = vmatprep.subr.bf16.mxu1 %v2708_v33 }
 0x119   : > { %2711 = vmatpush1.bf16.msra.mxu0 %v2710_v38  ;;  %2937 = vmatpush1.bf16.msra.mxu1 %v2710_v38 }
 0x11a   : > { %2713 = vmatprep.subr.bf16.mxu0 %v2712_v39  ;;  %2930 = vmatprep.subr.bf16.mxu1 %v2712_v39 }
 0x11d   : > { %2715 = vmatpush1.bf16.msra.mxu0 %v2714_v44  ;;  %2938 = vmatpush1.bf16.msra.mxu1 %v2714_v44 }
 0x11e   : > { %2717 = vmatprep.subr.bf16.mxu0 %v2716_v45  ;;  %2931 = vmatprep.subr.bf16.mxu1 %v2716_v45 }
 0x121   : > { %2719 = vmatpush1.bf16.msra.mxu0 %v2718_v48  ;;  %2939 = vmatpush1.bf16.msra.mxu1 %v2718_v48 }
 0x124   : > { %715 = vmatmul.mubr.f32.vlgmr.msra.gmra.mrb[0].mxu0 %v604_v49  ;;  %721 = vmatmul.mubr.f32.vlgmr.msra.gmra.mrb[0].mxu1 %v605_v50 }
 0x1f7   : > { %v716_v58 = vpop.f32.mrb[0].mxu0  ;;  %v722_v59 = vpop.f32.mrb[0].mxu1 }
 0x1f8   : > { %v717_v60 = vadd.f32 %v716_v58, %v643_v56  ;;  %v723_v61 = vadd.f32 %v722_v59, %v643_v56  ;;  %v718_v62 = vpop.f32.mrb[1].mxu0  ;;  %v724_v63 = vpop.f32.mrb[1].mxu1 }
 0x1f9   : > { %v719_v0 = vadd.f32 %v718_v62, %v647_v57  ;;  %v725_v1 = vadd.f32 %v724_v63, %v647_v57 }
 0x1fa   : > { %727 = vst [vmem:[#allocation2] sm:$0xff] %v717_v60  ;;  %728 = vst [vmem:[#allocation2 + $0x8] sm:$0xff] %v723_v61 }
 0x1fb   : > { %729 = vst [vmem:[#allocation3] sm:$0xff] %v719_v0  ;;  %730 = vst [vmem:[#allocation3 + $0x8] sm:$0xff] %v725_v1 }
 0x1fc PF: > { %v734_v2 = vld [vmem:[#allocation8] sm:$0xff]  ;;  %v735_v3 = vld [vmem:[#allocation8 + $0x8] sm:$0xff]  ;;  %v736_v4 = vld [vmem:[#allocation8 + $0x10] sm:$0xff]  ;;  %v3483_v5 = vmov 0.0|0.0   ;;  %vm3484_vm0 = vmmov 0   ;;  %v3485_v8 = vmov 0.0  }
 0x1fd   : > { %2720 = vmatprep.subr.bf16.mxu0 %v3483_v5  ;;  %v2721_v6 = vpack.c.bf16 %v735_v3, %v734_v2  ;;  %v737_v7 = vld [vmem:[#allocation8 + $0x18] sm:$0xff]  ;;  %2594 = vmatprep.mubr.msk.f32.mxu0 %vm3484_vm0, %v3485_v8  ;;  %vm831_vm1 = vcmask 261120   ;;  %v738_v10 = vld [vmem:[#allocation8 + $0x20] sm:$0xff]  ;;  %v739_v11 = vld [vmem:[#allocation8 + $0x28] sm:$0xff]  ;;  %s3486_s2 = smov 96   ;;  %s4245_s5 = sld [smem:[#allocation22_spill]] }
 0x1fe   : > { %2744 = vmatprep.subr.bf16.mxu1 %v3483_v5  ;;  %2601 = vmatprep.mubr.msk.f32.mxu1 %vm3484_vm0, %v3485_v8  ;;  %v2724_v9 = vpack.c.bf16 %v737_v7, %v736_v4  ;;  %vm3912_vm2 = vmpackc.low %vm831_vm1, %vm831_vm1  ;;  %v2727_v15 = vpack.c.bf16 %v739_v11, %v738_v10  ;;  %v740_v18 = vld [vmem:[#allocation8 + $0x30] sm:$0xff]  ;;  %v741_v19 = vld [vmem:[#allocation8 + $0x38] sm:$0xff]  ;;  %s4246_s16 = sld [smem:[#allocation29_spill]]  ;;  %vm911_vm3 = vcmask 130048   ;;  %s3487_s1 = smov 64   ;;  %vm1183_vm4 = vcmask 523520  }
 0x1ff   : > { %2722 = vmatpush3.bf16.msra.mxu0 %v2721_v6  ;;  %v2730_v20 = vpack.c.bf16 %v741_v19, %v740_v18  ;;  %v742_v21 = vld [vmem:[#allocation8 + $0x40] sm:$0xff]  ;;  %v743_v22 = vld [vmem:[#allocation8 + $0x48] sm:$0xff]  ;;  %v744_v24 = vld [vmem:[#allocation8 + $0x50] sm:$0xff]  ;;  %s3488_s12 = smov 32   ;;  %vm1370_vm5 = vcmask 785920   ;;  %vm1557_vm6 = vcmask 1048320  }
 0x200   : > { %2723 = vmatprep.subr.bf16.mxu0 %v3483_v5  ;;  %v2733_v23 = vpack.c.bf16 %v743_v22, %v742_v21  ;;  %v745_v25 = vld [vmem:[#allocation8 + $0x58] sm:$0xff]  ;;  %v746_v27 = vld [vmem:[#allocation8 + $0x60] sm:$0xff]  ;;  %v747_v28 = vld [vmem:[#allocation8 + $0x68] sm:$0xff]  ;;  %s4247_s30 = sld [smem:[#allocation33_spill]]  ;;  %s4249_s11 = sld [smem:[#allocation35_spill]] }
 0x201   : > { %v827_v12 = vld [vmem:[#allocation2] sm:$0xff]  ;;  %v828_v13 = vld [vmem:[#allocation2 + $0x8] sm:$0xff]  ;;  %v2736_v26 = vpack.c.bf16 %v745_v25, %v744_v24  ;;  %v2739_v29 = vpack.c.bf16 %v747_v28, %v746_v27  ;;  %v748_v30 = vld [vmem:[#allocation8 + $0x70] sm:$0xff]  ;;  %s4251_s29 = sld [smem:[#allocation39_spill]]  ;;  %p4257_p6 = scmp.ne.s32.totalorder %s4234_s10, 0 }
 0x202   : > { %v2745_v16 = vpack.c.bf16 %v828_v13, %v827_v12  ;;  %v3916_v17 = vpack.i.bf16 %v828_v13, %v827_v12  ;;  %v749_v31 = vld [vmem:[#allocation8 + $0x78] sm:$0xff]  ;;  %v829_v46 = vld [vmem:[#allocation3] sm:$0xff]  ;;  %v830_v47 = vld [vmem:[#allocation3 + $0x8] sm:$0xff] }
 0x203   : > { %2725 = vmatpush3.bf16.msra.mxu0 %v2724_v9  ;;  %s2404_s7 = sshll.u32 %s4245_s5, 3  ;;  %v2742_v32 = vpack.c.bf16 %v749_v31, %v748_v30  ;;  %v2749_v48 = vpack.c.bf16 %v830_v47, %v829_v46  ;;  %v3962_v62 = vpack.i.bf16 %v830_v47, %v829_v46 }
 0x204   : > { %2726 = vmatprep.subr.bf16.mxu0 %v3483_v5  ;;  %2747 = vmatpush3.bf16.xpose.msk.msra.mxu1 %vm3912_vm2, %v2745_v16  ;;  %s732_s17 = scalar_lea.vmem %s3873_s21, %s2404_s7 [#allocation5]  ;;  %v2405_v34 = vld [vmem:[%s4246_s16] ss:$0 sm:$0xff]  ;;  %s4254_s16 = sld [smem:[#allocation41_spill]] }
 0x205   : > { %3107 = vrot.lane.b32.xlu1 %v3916_v17, %s3486_s2  ;;  %2748 = vmatprep.subr.bf16.mxu1 %v3483_v5  ;;  %v3931_v33 = vld [vmem:[%s732_s17] sm:$0xff]  ;;  %s4253_s17 = sld [smem:[#allocation40_spill]] }
 0x207   : > { %2728 = vmatpush3.bf16.msra.mxu0 %v2727_v15 }
 0x208   : > { %2729 = vmatprep.subr.bf16.mxu0 %v3483_v5 }
 0x20b   : > { %2731 = vmatpush3.bf16.msra.mxu0 %v2730_v20 }
 0x20c   : > { %2732 = vmatprep.subr.bf16.mxu0 %v3483_v5 }
 0x20f   : > { %2734 = vmatpush3.bf16.msra.mxu0 %v2733_v23 }
 0x210   : > { %2735 = vmatprep.subr.bf16.mxu0 %v3483_v5 }
 0x213   : > { %2737 = vmatpush3.bf16.msra.mxu0 %v2736_v26 }
 0x214   : > { %2738 = vmatprep.subr.bf16.mxu0 %v3483_v5 }
 0x217   : > { %2740 = vmatpush3.bf16.msra.mxu0 %v2739_v29 }
 0x218   : > { %2741 = vmatprep.subr.bf16.mxu0 %v3483_v5 }
 0x21b   : > { %2743 = vmatpush3.bf16.msra.mxu0 %v2742_v32 }
 0x21c   : > { %2772 = vmatprep.subr.bf16.mxu0 %v3483_v5 }
 0x21e   : > { %2595 = vmatmul.mubr.f32.vlgmr.msra.gmra.mrb[0].mxu0 %v3931_v33 }
 0x21f   : > { %2685 = vmatprep.mubr.msk.f32.mxu0 %vm3484_vm0, %v3485_v8 }
 0x277   : > { %v3108_v50 = vpop.permute.xlu1 %3107 }
 0x278   : > { %v3110_v51 = vunpack.i.h.bf16 %v3108_v50  ;;  %v3109_v52 = vunpack.i.l.bf16 %v3108_v50 }
 0x27a   : > { %v2752_v54 = vpack.c.bf16 %v3110_v51, %v3109_v52 }
 0x2f1   : > { %v823_v35 = vpop.f32.mrb[0].mxu0 }
 0x2f2   : > { %v3940_v36 = vadd.f32 %v2405_v34, %v823_v35  ;;  %v2596_v37 = vpop.f32.mrb[1].mxu0 }
 0x2f4   : > { %1002 = vrot.lane.b32.xlu1 %v3940_v36, %s3486_s2  ;;  %2602 = vmatmul.mubr.msk.f32.vlgmr.msra.gmra.mrb[0].mxu1 %vm831_vm1, %v3940_v36 }
 0x2f5   : > { %2608 = vmatprep.mubr.msk.f32.mxu1 %vm3484_vm0, %v3485_v8  ;;  %2750 = vmatpush3.bf16.msra.mxu1 %v2749_v48 }
 0x2f6   : > { %2751 = vmatprep.subr.bf16.mxu1 %v3483_v5 }
 0x366   : > { %v1003_v56 = vpop.permute.xlu1 %1002 }
 0x3c7   : > { %v907_v38 = vpop.f32.mrb[0].mxu1 }
 0x3c8   : > { %v2603_v39 = vpop.f32.mrb[1].mxu1  ;;  %v912_v40 = vsel %vm911_vm3, %v907_v38, -inf }
 0x3c9   : > { %913 = vmax.xlane.f32.xlu0 %v912_v40 }
 0x456   : > { %v914_v41 = vpop.xlane.xlu0 %913 }
 0x457   : > { %v915_v42 = vsub.f32 %v907_v38, %v914_v41 }
 0x459   : > { %v916_v43 = vmul.f32 1.442695, %v915_v42 }
 0x45b   : > { %3136 = vpow2.f32 %v916_v43 }
 0x465   : > { %v3137_v44 = vpop.eup %3136 }
 0x466   : > { %v918_v45 = vsel %vm911_vm3, %v3137_v44, 0.0 }
 0x467   : > { %919 = vadd.xlane.f32.xlu0 %v918_v45 }
 0x4f4   : > { %v920_v49 = vpop.xlane.xlu0 %919 }
 0x4f5   : > { %3138 = vrcp.f32 %v920_v49 }
 0x4ff   : > { %v3139_v53 = vpop.eup %3138 }
 0x500   : > { %v923_v55 = vmul.f32 %v3139_v53, %v3137_v44 }
 0x502   : > { %2609 = vmatmul.mubr.msk.f32.vlgmr.msra.gmra.mrb[2].mxu1 %vm911_vm3, %v923_v55 }
 0x503   : > { %2754 = vmatpush3.bf16.xpose.msk.msra.mxu1 %vm3912_vm2, %v2752_v54  ;;  %2615 = vmatprep.mubr.msk.f32.mxu1 %vm3484_vm0, %v3485_v8 }
 0x504   : > { %2755 = vmatprep.subr.bf16.mxu1 %v3483_v5 }
 0x50a   : > { %2616 = vmatmul.mubr.msk.f32.vlgmr.msra.gmra.mrb[4].mxu1 %vm831_vm1, %v1003_v56 }
 0x50b   : > { %2622 = vmatprep.mubr.msk.f32.mxu1 %vm3484_vm0, %v3485_v8 }
 0x5d5   : > { %v993_v57 = vpop.f32.mrb[2].mxu1 }
 0x5d6   : > { %997 = vst.msk [vmem:[#allocation4] sm:$0xff] %vm831_vm1, %v993_v57  ;;  %v2610_v58 = vpop.f32.mrb[3].mxu1 }
 0x5dd   : > { %v1082_v59 = vpop.f32.mrb[4].mxu1 }
 0x5de   : > { %v2617_v60 = vpop.f32.mrb[5].mxu1  ;;  %v1086_v61 = vsel %vm911_vm3, %v1082_v59, -inf }
 0x5df   : > { %1087 = vmax.xlane.f32.xlu0 %v1086_v61  ;;  %v1560_v60 = vld [vmem:[#allocation11] sm:$0xff]  ;;  %v1561_v61 = vld [vmem:[#allocation11 + $0x8] sm:$0xff] }
 0x5f5   : > { %3112 = vrot.lane.b32.xlu0 %v3962_v62, %s3486_s2 }
 0x5f9   : > { %3117 = vrot.lane.b32.xlu0 %v3916_v17, %s3487_s1 }
 0x5fd   : > { %1189 = vrot.lane.b32.xlu0 %v3940_v36, %s3487_s1 }
 0x66c   : > { %v1088_v63 = vpop.xlane.xlu0 %1087 }
 0x66d   : > { %v1089_v0 = vsub.f32 %v1082_v59, %v1088_v63  ;;  %v2773_v63 = vpack.c.bf16 %v1561_v61, %v1560_v60  ;;  %v1702_v60 = vld [vmem:[#allocation13 + $0xa0] sm:$0xff]  ;;  %v1700_v61 = vld [vmem:[#allocation13 + $0x90] sm:$0xff] }
 0x66f   : > { %v1090_v1 = vmul.f32 1.442695, %v1089_v0  ;;  %v1563_v0 = vld [vmem:[#allocation11 + $0x18] sm:$0xff]  ;;  %2774 = vmatpush3.bf16.msra.mxu0 %v2773_v63 }
 0x670   : > { %v3113_v2 = vpop.permute.xlu0 %3112  ;;  %2775 = vmatprep.subr.bf16.mxu0 %v3483_v5 }
 0x671   : > { %3140 = vpow2.f32 %v1090_v1  ;;  %v3115_v3 = vunpack.i.h.bf16 %v3113_v2  ;;  %v3114_v4 = vunpack.i.l.bf16 %v3113_v2  ;;  %v1564_v2 = vld [vmem:[#allocation11 + $0x20] sm:$0xff] }
 0x673   : > { %v2756_v6 = vpack.c.bf16 %v3115_v3, %v3114_v4  ;;  %v1565_v3 = vld [vmem:[#allocation11 + $0x28] sm:$0xff] }
 0x674   : > { %v3118_v11 = vpop.permute.xlu0 %3117  ;;  %v2779_v4 = vpack.c.bf16 %v1565_v3, %v1564_v2 }
 0x675   : > { %2757 = vmatpush3.bf16.msra.mxu1 %v2756_v6  ;;  %v3120_v12 = vunpack.i.h.bf16 %v3118_v11  ;;  %v3119_v13 = vunpack.i.l.bf16 %v3118_v11  ;;  %v1566_v6 = vld [vmem:[#allocation11 + $0x30] sm:$0xff]  ;;  %v1569_v11 = vld [vmem:[#allocation11 + $0x48] sm:$0xff] }
 0x676   : > { %2758 = vmatprep.subr.bf16.mxu1 %v3483_v5 }
 0x677   : > { %v2759_v16 = vpack.c.bf16 %v3120_v12, %v3119_v13  ;;  %v1570_v13 = vld [vmem:[#allocation11 + $0x50] sm:$0xff] }
 0x678   : > { %v1190_v19 = vpop.permute.xlu0 %1189 }
 0x67b   : > { %v3141_v7 = vpop.eup %3140 }
 0x67c   : > { %v1092_v9 = vsel %vm911_vm3, %v3141_v7, 0.0 }
 0x67d   : > { %1093 = vadd.xlane.f32.xlu1 %v1092_v9 }
 0x68e   : > { %3122 = vrot.lane.b32.xlu1 %v3962_v62, %s3487_s1 }
 0x692   : > { %3127 = vrot.lane.b32.xlu1 %v3916_v17, %s3488_s12 }
 0x70a   : > { %v1094_v10 = vpop.xlane.xlu1 %1093 }
 0x70b   : > { %3142 = vrcp.f32 %v1094_v10  ;;  %v1568_v10 = vld [vmem:[#allocation11 + $0x40] sm:$0xff] }
 0x70c   : > { %v2785_v12 = vpack.c.bf16 %v1569_v11, %v1568_v10  ;;  %v1713_v11 = vld [vmem:[#allocation13 + $0xf8] sm:$0xff] }
 0x70e   : > { %v3123_v25 = vpop.permute.xlu1 %3122 }
 0x70f   : > { %v3125_v26 = vunpack.i.h.bf16 %v3123_v25  ;;  %v3124_v27 = vunpack.i.l.bf16 %v3123_v25 }
 0x711   : > { %v2763_v28 = vpack.c.bf16 %v3125_v26, %v3124_v27 }
 0x712   : > { %v3128_v34 = vpop.permute.xlu1 %3127 }
 0x713   : > { %v3130_v37 = vunpack.i.h.bf16 %v3128_v34  ;;  %v3129_v38 = vunpack.i.l.bf16 %v3128_v34  ;;  %v1685_v34 = vld [vmem:[#allocation13 + $0x18] sm:$0xff] }
 0x715   : > { %v3143_v15 = vpop.eup %3142  ;;  %v2766_v41 = vpack.c.bf16 %v3130_v37, %v3129_v38  ;;  %v1689_v37 = vld [vmem:[#allocation13 + $0x38] sm:$0xff]  ;;  %v1682_v38 = vld [vmem:[#allocation13] sm:$0xff] }
 0x716   : > { %v1097_v18 = vmul.f32 %v3143_v15, %v3141_v7  ;;  %v1567_v7 = vld [vmem:[#allocation11 + $0x38] sm:$0xff] }
 0x717   : > { %v2782_v9 = vpack.c.bf16 %v1567_v7, %v1566_v6  ;;  %v1571_v15 = vld [vmem:[#allocation11 + $0x58] sm:$0xff]  ;;  %v1707_v6 = vld [vmem:[#allocation13 + $0xc8] sm:$0xff] }
 0x718   : > { %2623 = vmatmul.mubr.msk.f32.vlgmr.msra.gmra.mrb[6].mxu1 %vm911_vm3, %v1097_v18  ;;  %v1572_v18 = vld [vmem:[#allocation11 + $0x60] sm:$0xff]  ;;  %v1711_v7 = vld [vmem:[#allocation13 + $0xe8] sm:$0xff] }
 0x719   : > { %2761 = vmatpush3.bf16.xpose.msk.msra.mxu1 %vm3912_vm2, %v2759_v16  ;;  %2629 = vmatprep.mubr.msk.f32.mxu1 %vm3484_vm0, %v3485_v8  ;;  %v2788_v16 = vpack.c.bf16 %v1571_v15, %v1570_v13  ;;  %v2808_v10 = vpack.c.bf16 %v1711_v7, %v1707_v6  ;;  %v1710_v13 = vld [vmem:[#allocation13 + $0xe0] sm:$0xff] }
 0x71a   : > { %2762 = vmatprep.subr.bf16.mxu1 %v3483_v5 }
 0x720   : > { %2630 = vmatmul.mubr.msk.f32.vlgmr.msra.gmra.mrb[8].mxu1 %vm831_vm1, %v1190_v19  ;;  %v1573_v19 = vld [vmem:[#allocation11 + $0x68] sm:$0xff] }
 0x721   : > { %2636 = vmatprep.mubr.msk.f32.mxu1 %vm3484_vm0, %v3485_v8  ;;  %2764 = vmatpush3.bf16.msra.mxu1 %v2763_v28  ;;  %v2422_v28 = vld [vmem:[%s4247_s30] ss:$0 sm:$0xff]  ;;  %s4252_s30 = sld [smem:[#allocation23_spill]] }
 0x722   : > { %2765 = vmatprep.subr.bf16.mxu1 %v3483_v5 }
 0x727   : > { %s2429_s25 = sshll.u32 %s4252_s30, 1  ;;  %s4255_s30 = sld [smem:[#allocation42_spill]] }
 0x728   : > { %s2246_s4 = sadd.s32 %s4245_s5, %s2429_s25  ;;  %s4256_s5 = sand.u32 1, %s3432_s19  }
 0x729   : > { %s2235_s25 = scalar_lea.sflag [#allocation7], %s4256_s5 }
 0x7eb   : > { %v1175_v20 = vpop.f32.mrb[6].mxu1 }
 0x7ec   : > { %v2624_v21 = vpop.f32.mrb[7].mxu1 }
 0x7ed   : > { %v1574_v21 = vld [vmem:[#allocation11 + $0x70] sm:$0xff] }
 0x7f3   : > { %v1269_v22 = vpop.f32.mrb[8].mxu1 }
 0x7f4   : > { %v2631_v23 = vpop.f32.mrb[9].mxu1  ;;  %v1273_v24 = vsel %vm911_vm3, %v1269_v22, -inf }
 0x7f5   : > { %1274 = vmax.xlane.f32.xlu0 %v1273_v24 }
 0x882   : > { %v1275_v29 = vpop.xlane.xlu0 %1274 }
 0x883   : > { %v1276_v30 = vsub.f32 %v1269_v22, %v1275_v29  ;;  %v1575_v22 = vld [vmem:[#allocation11 + $0x78] sm:$0xff] }
 0x884   : > { %v2794_v23 = vpack.c.bf16 %v1575_v22, %v1574_v21  ;;  %v1715_v21 = vld [vmem:[#allocation13 + $0x108] sm:$0xff] }
 0x885   : > { %v1277_v31 = vmul.f32 1.442695, %v1276_v30  ;;  %v1719_v22 = vld [vmem:[#allocation13 + $0x128] sm:$0xff] }
 0x887   : > { %3144 = vpow2.f32 %v1277_v31 }
 0x891   : > { %v3145_v32 = vpop.eup %3144 }
 0x892   : > { %v1279_v17 = vsel %vm911_vm3, %v3145_v32, 0.0 }
 0x893   : > { %1280 = vadd.xlane.f32.xlu1 %v1279_v17  ;;  %v1687_v17 = vld [vmem:[#allocation13 + $0x28] sm:$0xff] }
 0x8a4   : > { %1376 = vrot.lane.b32.xlu1 %v3940_v36, %s3488_s12 }
 0x920   : > { %v1281_v35 = vpop.xlane.xlu1 %1280 }
 0x921   : > { %3146 = vrcp.f32 %v1281_v35 }
 0x924   : > { %v1377_v42 = vpop.permute.xlu1 %1376 }
 0x92b   : > { %v3147_v39 = vpop.eup %3146 }
 0x92c   : > { %v1284_v40 = vmul.f32 %v3147_v39, %v3145_v32  ;;  %v1683_v32 = vld [vmem:[#allocation13 + $0x8] sm:$0xff]  ;;  %v1686_v39 = vld [vmem:[#allocation13 + $0x20] sm:$0xff] }
 0x92d   : > { %v2796_v35 = vpack.c.bf16 %v1687_v17, %v1683_v32  ;;  %v1727_v17 = vld [vmem:[#allocation13 + $0x168] sm:$0xff] }
 0x92e   : > { %2637 = vmatmul.mubr.msk.f32.vlgmr.msra.gmra.mrb[10].mxu1 %vm911_vm3, %v1284_v40  ;;  %v2828_v40 = vpack.c.bf16 %v1689_v37, %v1685_v34  ;;  %v1725_v34 = vld [vmem:[#allocation13 + $0x158] sm:$0xff] }
 0x92f   : > { %2768 = vmatpush3.bf16.xpose.msk.msra.mxu1 %vm3912_vm2, %v2766_v41  ;;  %2643 = vmatprep.mubr.msk.f32.mxu1 %vm3484_vm0, %v3485_v8  ;;  %v2798_v41 = vpack.c.bf16 %v1686_v39, %v1682_v38  ;;  %v1722_v39 = vld [vmem:[#allocation13 + $0x140] sm:$0xff] }
 0x930   : > { %2769 = vmatprep.subr.bf16.mxu1 %v3483_v5 }
 0x936   : > { %2644 = vmatmul.mubr.msk.f32.vlgmr.msra.gmra.mrb[12].mxu1 %vm831_vm1, %v1377_v42  ;;  %v1688_v42 = vld [vmem:[#allocation13 + $0x30] sm:$0xff] }
 0x937   : > { %2650 = vmatprep.mubr.msk.f32.mxu1 %vm3484_vm0, %v3485_v8 }
 0xa01   : > { %v1362_v36 = vpop.f32.mrb[10].mxu1 }
 0xa02   : > { %v2638_v43 = vpop.f32.mrb[11].mxu1 }
 0xa09   : > { %v1456_v44 = vpop.f32.mrb[12].mxu1 }
 0xa0a   : > { %v2645_v45 = vpop.f32.mrb[13].mxu1  ;;  %v1460_v46 = vsel %vm911_vm3, %v1456_v44, -inf }
 0xa0b   : > { %1461 = vmax.xlane.f32.xlu0 %v1460_v46  ;;  %v1693_v45 = vld [vmem:[#allocation13 + $0x58] sm:$0xff] }
 0xa0c   : > { %v1697_v46 = vld [vmem:[#allocation13 + $0x78] sm:$0xff] }
 0xa21   : > { %3132 = vrot.lane.b32.xlu0 %v3962_v62, %s3488_s12  ;;  %v1562_v62 = vld [vmem:[#allocation11 + $0x10] sm:$0xff] }
 0xa22   : > { %v2776_v1 = vpack.c.bf16 %v1563_v0, %v1562_v62  ;;  %v1704_v62 = vld [vmem:[#allocation13 + $0xb0] sm:$0xff] }
 0xa23   : > { %v2838_v0 = vpack.c.bf16 %v1704_v62, %v1700_v61  ;;  %v1740_v61 = vld [vmem:[#allocation13 + $0x1d0] sm:$0xff] }
 0xa24   : > { %2777 = vmatpush3.bf16.msra.mxu0 %v2776_v1  ;;  %v1744_v62 = vld [vmem:[#allocation13 + $0x1f0] sm:$0xff] }
 0xa25   : > { %1180 = vrot.lane.b32.xlu0 %v1175_v20, %s3488_s12  ;;  %2778 = vmatprep.subr.bf16.mxu0 %v3483_v5  ;;  %v2791_v20 = vpack.c.bf16 %v1573_v19, %v1572_v18  ;;  %v1708_v18 = vld [vmem:[#allocation13 + $0xd0] sm:$0xff]  ;;  %s2250_s12 = sshll.u32 %s599_s0, 4  ;;  %s4101_s12 = int_to_ptr.vmem [resolvable:$true] %s2250_s12 }
 0xa26   : > { %v1712_v19 = vld [vmem:[#allocation13 + $0xf0] sm:$0xff] }
 0xa28   : > { %2780 = vmatpush3.bf16.msra.mxu0 %v2779_v4 }
 0xa29   : > { %1367 = vrot.lane.b32.xlu0 %v1362_v36, %s3487_s1  ;;  %2781 = vmatprep.subr.bf16.mxu0 %v3483_v5  ;;  %v1691_v36 = vld [vmem:[#allocation13 + $0x48] sm:$0xff]  ;;  %s4250_s1 = sld [smem:[#allocation37_spill]] }
 0xa2c   : > { %2783 = vmatpush3.bf16.msra.mxu0 %v2782_v9  ;;  %v1709_v9 = vld [vmem:[#allocation13 + $0xd8] sm:$0xff] }
 0xa2d   : > { %2784 = vmatprep.subr.bf16.mxu0 %v3483_v5  ;;  %v2840_v15 = vpack.c.bf16 %v1713_v11, %v1709_v9 }
 0xa30   : > { %2786 = vmatpush3.bf16.msra.mxu0 %v2785_v12  ;;  %v1706_v12 = vld [vmem:[#allocation13 + $0xc0] sm:$0xff] }
 0xa31   : > { %2787 = vmatprep.subr.bf16.mxu0 %v3483_v5 }
 0xa34   : > { %2789 = vmatpush3.bf16.msra.mxu0 %v2788_v16  ;;  %v2810_v16 = vpack.c.bf16 %v1710_v13, %v1706_v12  ;;  %v2010_v13 = vld [vmem:[#allocation14 + $0x80] sm:$0xff] }
 0xa35   : > { %2790 = vmatprep.subr.bf16.mxu0 %v3483_v5 }
 0xa38   : > { %2792 = vmatpush3.bf16.msra.mxu0 %v2791_v20  ;;  %v2842_v20 = vpack.c.bf16 %v1712_v19, %v1708_v18  ;;  %v2043_v19 = vld [vmem:[#allocation14 + $0x188] sm:$0xff] }
 0xa39   : > { %2793 = vmatprep.subr.bf16.mxu0 %v3483_v5 }
 0xa3c   : > { %2795 = vmatpush3.bf16.msra.mxu0 %v2794_v23  ;;  %v1717_v23 = vld [vmem:[#allocation13 + $0x118] sm:$0xff] }
 0xa3d   : > { %2829 = vmatprep.subr.bf16.mxu0 %v2828_v40  ;;  %v1726_v40 = vld [vmem:[#allocation13 + $0x160] sm:$0xff] }
 0xa98   : > { %v1462_v14 = vpop.xlane.xlu0 %1461 }
 0xa99   : > { %v1463_v47 = vsub.f32 %v1456_v44, %v1462_v14  ;;  %v1695_v44 = vld [vmem:[#allocation13 + $0x68] sm:$0xff]  ;;  %v2832_v14 = vpack.c.bf16 %v1697_v46, %v1693_v45  ;;  %v1733_v46 = vld [vmem:[#allocation13 + $0x198] sm:$0xff] }
 0xa9b   : > { %v1464_v48 = vmul.f32 1.442695, %v1463_v47  ;;  %v1690_v47 = vld [vmem:[#allocation13 + $0x40] sm:$0xff] }
 0xa9c   : > { %v3133_v49 = vpop.permute.xlu0 %3132 }
 0xa9d   : > { %3148 = vpow2.f32 %v1464_v48  ;;  %v3135_v50 = vunpack.i.h.bf16 %v3133_v49  ;;  %v3134_v51 = vunpack.i.l.bf16 %v3133_v49  ;;  %v1694_v48 = vld [vmem:[#allocation13 + $0x60] sm:$0xff]  ;;  %v1692_v49 = vld [vmem:[#allocation13 + $0x50] sm:$0xff] }
 0xa9f   : > { %v2770_v52 = vpack.c.bf16 %v3135_v50, %v3134_v51  ;;  %v2802_v50 = vpack.c.bf16 %v1694_v48, %v1690_v47  ;;  %v1696_v51 = vld [vmem:[#allocation13 + $0x70] sm:$0xff]  ;;  %v1734_v48 = vld [vmem:[#allocation13 + $0x1a0] sm:$0xff] }
 0xaa0   : > { %v1181_v53 = vpop.permute.xlu0 %1180 }
 0xaa1   : > { %1184 = vst.msk [vmem:[#allocation4] sm:$0xff] %vm1183_vm4, %v1181_v53  ;;  %2771 = vmatpush3.bf16.msra.mxu1 %v2770_v52  ;;  %v1699_v52 = vld [vmem:[#allocation13 + $0x88] sm:$0xff] }
 0xaa2   : > { %2797 = vmatprep.subr.bf16.mxu1 %v2796_v35  ;;  %v1703_v53 = vld [vmem:[#allocation13 + $0xa8] sm:$0xff]  ;;  %v1729_v35 = vld [vmem:[#allocation13 + $0x178] sm:$0xff] }
 0xaa3   : > { %v2848_v38 = vpack.c.bf16 %v1729_v35, %v1725_v34  ;;  %v2029_v35 = vld [vmem:[#allocation14 + $0x118] sm:$0xff] }
 0xaa4   : > { %v1368_v54 = vpop.permute.xlu0 %1367 }
 0xaa5   : > { %1371 = vst.msk [vmem:[#allocation4] sm:$0xff] %vm1370_vm5, %v1368_v54  ;;  %v2834_v54 = vpack.c.bf16 %v1696_v51, %v1692_v49  ;;  %v1732_v49 = vld [vmem:[#allocation13 + $0x190] sm:$0xff] }
 0xaa7   : > { %v3149_v55 = vpop.eup %3148 }
 0xaa8   : > { %v1466_v56 = vsel %vm911_vm3, %v3149_v55, 0.0 }
 0xaa9   : > { %1467 = vadd.xlane.f32.xlu1 %v1466_v56  ;;  %v1701_v56 = vld [vmem:[#allocation13 + $0x98] sm:$0xff] }
 0xb36   : > { %v1468_v57 = vpop.xlane.xlu1 %1467 }
 0xb37   : > { %3150 = vrcp.f32 %v1468_v57  ;;  %v1705_v57 = vld [vmem:[#allocation13 + $0xb8] sm:$0xff] }
 0xb41   : > { %v3151_v58 = vpop.eup %3150 }
 0xb42   : > { %v1471_v59 = vmul.f32 %v3151_v58, %v3149_v55  ;;  %v2804_v55 = vpack.c.bf16 %v1703_v53, %v1699_v52  ;;  %v1698_v58 = vld [vmem:[#allocation13 + $0x80] sm:$0xff]  ;;  %v1739_v52 = vld [vmem:[#allocation13 + $0x1c8] sm:$0xff] }
 0xb43   : > { %v2806_v63 = vpack.c.bf16 %v1702_v60, %v1698_v58  ;;  %v1743_v53 = vld [vmem:[#allocation13 + $0x1e8] sm:$0xff]  ;;  %v1738_v58 = vld [vmem:[#allocation13 + $0x1c0] sm:$0xff] }
 0xb44   : > { %2651 = vmatmul.mubr.msk.f32.vlgmr.msra.gmra.mrb[14].mxu1 %vm911_vm3, %v1471_v59  ;;  %v2836_v59 = vpack.c.bf16 %v1705_v57, %v1701_v56  ;;  %v2824_v56 = vpack.c.bf16 %v1743_v53, %v1739_v52  ;;  %v1745_v57 = vld [vmem:[#allocation13 + $0x1f8] sm:$0xff] }
 0xb45   : > { %1832 = vmatprep.mubr.f32.mxu1 %v3485_v8  ;;  %2799 = vmatpush1.bf16.msra.mxu1 %v2798_v41  ;;  %v1724_v41 = vld [vmem:[#allocation13 + $0x150] sm:$0xff]  ;;  %v2001_v52 = vld [vmem:[#allocation14 + $0x38] sm:$0xff] }
 0xc17   : > { %v1549_v24 = vpop.f32.mrb[14].mxu1 }
 0xc18   : > { %1554 = vrot.lane.b32.xlu0 %v1549_v24, %s3486_s2  ;;  %v2652_v25 = vpop.f32.mrb[15].mxu1  ;;  %v2812_v24 = vpack.c.bf16 %v1719_v22, %v1715_v21  ;;  %s4248_s2 = sld [smem:[#allocation34_spill]]  ;;  %v1995_v21 = vld [vmem:[#allocation14 + $0x8] sm:$0xff] }
 0xc19   : > { %v1721_v25 = vld [vmem:[#allocation13 + $0x138] sm:$0xff] }
 0xc1e   : > { %v2423_v7 = vld [vmem:[%s4248_s2] ss:$0 sm:$0xff]  ;;  %s3334_s2 = scalar_lea.vmem %s4101_s12, 128 }
 0xc1f   : > { %p3335_p2 = scmp.ne.s32.totalorder %s4101_s12, %s3334_s2 }
 0xc21   : > { %p3336_p9 = pnand %p3335_p2, %p4257_p6 }
 0xc23   : > { %p3337_p11 = pneg %p3336_p9 }
 0xc8a   : > { %v1555_v26 = vpop.permute.xlu0 %1554 }
 0xc8b   : > { %1558 = vst.msk [vmem:[#allocation4] sm:$0xff] %vm1557_vm6, %v1555_v26  ;;  %v1714_v26 = vld [vmem:[#allocation13 + $0x100] sm:$0xff] }
 0xc92   : > { %v1559_v27 = vld [vmem:[#allocation4] sm:$0xff] }
 0xc93   : > { %2686 = vmatmul.mubr.f32.vlgmr.msra.gmra.mrb[2].mxu0 %v1559_v27  ;;  %v1718_v27 = vld [vmem:[#allocation13 + $0x120] sm:$0xff] }
 0xc94   : > { %1903 = vmatprep.mubr.f32.mxu0 %v3485_v8  ;;  %v1684_v8 = vld [vmem:[#allocation13 + $0x10] sm:$0xff] }
 0xc95   : > { %v2830_v43 = vpack.c.bf16 %v1688_v42, %v1684_v8  ;;  %v2818_v8 = vpack.c.bf16 %v1726_v40, %v1722_v39  ;;  %v1728_v42 = vld [vmem:[#allocation13 + $0x170] sm:$0xff] }
 0xc97   : > { %2831 = vmatpush1.bf16.msra.mxu0 %v2830_v43  ;;  %v1735_v43 = vld [vmem:[#allocation13 + $0x1a8] sm:$0xff] }
 0xc98   : > { %2833 = vmatprep.subr.bf16.mxu0 %v2832_v14  ;;  %v1730_v14 = vld [vmem:[#allocation13 + $0x180] sm:$0xff] }
 0xc99   : > { %v2822_v51 = vpack.c.bf16 %v1734_v48, %v1730_v14  ;;  %v2017_v14 = vld [vmem:[#allocation14 + $0xb8] sm:$0xff] }
 0xc9b   : > { %2835 = vmatpush1.bf16.msra.mxu0 %v2834_v54  ;;  %v1741_v54 = vld [vmem:[#allocation13 + $0x1d8] sm:$0xff] }
 0xc9c   : > { %2837 = vmatprep.subr.bf16.mxu0 %v2836_v59  ;;  %v1742_v59 = vld [vmem:[#allocation13 + $0x1e0] sm:$0xff]  ;;  %v2856_v60 = vpack.c.bf16 %v1745_v57, %v1741_v54  ;;  %v2032_v54 = vld [vmem:[#allocation14 + $0x130] sm:$0xff]  ;;  %v2019_v57 = vld [vmem:[#allocation14 + $0xc8] sm:$0xff] }
 0xc9f   : > { %2839 = vmatpush1.bf16.msra.mxu0 %v2838_v0  ;;  %v2858_v0 = vpack.c.bf16 %v1744_v62, %v1740_v61 }
 0xca0   : > { %2841 = vmatprep.subr.bf16.mxu0 %v2840_v15  ;;  %v2011_v15 = vld [vmem:[#allocation14 + $0x88] sm:$0xff] }
 0xca1   : > { %v2860_v18 = vpack.c.bf16 %v2011_v15, %v2010_v13 }
 0xca3   : > { %2843 = vmatpush1.bf16.msra.mxu0 %v2842_v20  ;;  %v1994_v20 = vld [vmem:[#allocation14] sm:$0xff] }
 0xd66   : > { %v1649_v29 = vpop.f32.mrb[2].mxu0 }
 0xd67   : > { %v1650_v30 = vadd.f32 %v2422_v28, %v1649_v29  ;;  %v2687_v31 = vpop.f32.mrb[3].mxu0  ;;  %v2844_v28 = vpack.c.bf16 %v1721_v25, %v1717_v23  ;;  %v2814_v29 = vpack.c.bf16 %v1718_v27, %v1714_v26  ;;  %v2026_v23 = vld [vmem:[#allocation14 + $0x100] sm:$0xff]  ;;  %v2012_v25 = vld [vmem:[#allocation14 + $0x90] sm:$0xff]  ;;  %v2013_v27 = vld [vmem:[#allocation14 + $0x98] sm:$0xff] }
 0xd68   : > { %v1720_v31 = vld [vmem:[#allocation13 + $0x130] sm:$0xff] }
 0xd69   : > { %v1653_v5 = vadd.f32 %v1650_v30, %v3931_v33  ;;  %v2800_v33 = vpack.c.bf16 %v1695_v44, %v1691_v36  ;;  %v1716_v30 = vld [vmem:[#allocation13 + $0x110] sm:$0xff]  ;;  %2845 = vmatprep.subr.bf16.mxu0 %v2844_v28  ;;  %v1731_v36 = vld [vmem:[#allocation13 + $0x188] sm:$0xff]  ;;  %v2850_v44 = vpack.c.bf16 %v1728_v42, %v1724_v41  ;;  %v2046_v41 = vld [vmem:[#allocation14 + $0x1a0] sm:$0xff] }
 0xd6a   : > { %v2846_v32 = vpack.c.bf16 %v1720_v31, %v1716_v30  ;;  %v2820_v45 = vpack.c.bf16 %v1735_v43, %v1731_v36  ;;  %v2044_v28 = vld [vmem:[#allocation14 + $0x190] sm:$0xff]  ;;  %v2864_v30 = vpack.c.bf16 %v2013_v27, %v2012_v25  ;;  %v1998_v42 = vld [vmem:[#allocation14 + $0x20] sm:$0xff]  ;;  %v1999_v43 = vld [vmem:[#allocation14 + $0x28] sm:$0xff] }
 0xd6b   : > { %1656 = vadd.xlane.f32.xlu1 %v1653_v5  ;;  %2801 = vmatprep.subr.bf16.mxu1 %v2800_v33  ;;  %v1737_v33 = vld [vmem:[#allocation13 + $0x1b8] sm:$0xff] }
 0xd6c   : > { %2803 = vmatpush1.bf16.msra.mxu1 %v2802_v50  ;;  %2847 = vmatpush1.bf16.msra.mxu0 %v2846_v32  ;;  %v2852_v47 = vpack.c.bf16 %v1737_v33, %v1733_v46  ;;  %v1736_v50 = vld [vmem:[#allocation13 + $0x1b0] sm:$0xff]  ;;  %v1997_v32 = vld [vmem:[#allocation14 + $0x18] sm:$0xff]  ;;  %v2870_v46 = vpack.c.bf16 %v1999_v43, %v1998_v42 }
 0xd6d   : > { %2805 = vmatprep.subr.bf16.mxu1 %v2804_v55  ;;  %2849 = vmatprep.subr.bf16.mxu0 %v2848_v38  ;;  %v2854_v55 = vpack.c.bf16 %v1736_v50, %v1732_v49  ;;  %v2015_v38 = vld [vmem:[#allocation14 + $0xa8] sm:$0xff]  ;;  %v2016_v33 = vld [vmem:[#allocation14 + $0xb0] sm:$0xff]  ;;  %v2049_v50 = vld [vmem:[#allocation14 + $0x1b8] sm:$0xff] }
 0xd6e   : > { %v2872_v49 = vpack.c.bf16 %v2017_v14, %v2016_v33  ;;  %v2040_v42 = vld [vmem:[#allocation14 + $0x170] sm:$0xff] }
 0xd70   : > { %2807 = vmatpush1.bf16.msra.mxu1 %v2806_v63  ;;  %2851 = vmatpush1.bf16.msra.mxu0 %v2850_v44  ;;  %v2826_v63 = vpack.c.bf16 %v1742_v59, %v1738_v58  ;;  %v2030_v44 = vld [vmem:[#allocation14 + $0x120] sm:$0xff]  ;;  %v2051_v59 = vld [vmem:[#allocation14 + $0x1c8] sm:$0xff] }
 0xd71   : > { %2809 = vmatprep.subr.bf16.mxu1 %v2808_v10  ;;  %2853 = vmatprep.subr.bf16.mxu0 %v2852_v47  ;;  %v2424_v10 = vld [vmem:[%s4249_s11] ss:$0 sm:$0xff]  ;;  %v2048_v47 = vld [vmem:[#allocation14 + $0x1b0] sm:$0xff]  ;;  %v2050_v58 = vld [vmem:[#allocation14 + $0x1c0] sm:$0xff] }
 0xd72   : > { %v2904_v53 = vpack.c.bf16 %v2049_v50, %v2048_v47  ;;  %v1746_v47 = vld [vmem:[%s4250_s1] sm:$0xf]  ;;  %s2430_s1 = sshll.u32 %s2246_s4, 7  ;;  %s3489_s4 = smov [#allocation16]  }
 0xd73   : > { %s4099_s9 = scalar_lea.hbm %s4255_s30, %s2430_s1  ;;  %s3338_s7 = sshll.u32 %s3489_s4, 4  ;;  %s3339_s7 = int_to_ptr.vmem [resolvable:$false] %s3338_s7 }
 0xd74   : > { %2811 = vmatpush1.bf16.msra.mxu1 %v2810_v16  ;;  %2855 = vmatpush1.bf16.msra.mxu0 %v2854_v55  ;;  %v2042_v16 = vld [vmem:[#allocation14 + $0x180] sm:$0xff]  ;;  %v2033_v55 = vld [vmem:[#allocation14 + $0x138] sm:$0xff]  ;;  %p3341_p8 = scmp.lt.s32.totalorder %s4101_s12, %s3339_s7 }
 0xd75   : > { %2813 = vmatprep.subr.bf16.mxu1 %v2812_v24  ;;  %2857 = vmatprep.subr.bf16.mxu0 %v2856_v60  ;;  %v2892_v22 = vpack.c.bf16 %v2043_v19, %v2042_v16  ;;  %v2027_v24 = vld [vmem:[#allocation14 + $0x108] sm:$0xff]  ;;  %v2906_v61 = vpack.c.bf16 %v2033_v55, %v2032_v54  ;;  %v2004_v16 = vld [vmem:[#allocation14 + $0x50] sm:$0xff] }
 0xd76   : > { %v2894_v26 = vpack.c.bf16 %v2027_v24, %v2026_v23  ;;  %v2036_v19 = vld [vmem:[#allocation14 + $0x150] sm:$0xff]  ;;  %v2054_v23 = vld [vmem:[#allocation14 + $0x1e0] sm:$0xff]  ;;  %v2055_v24 = vld [vmem:[#allocation14 + $0x1e8] sm:$0xff] }
 0xd78   : > { %2815 = vmatpush1.bf16.msra.mxu1 %v2814_v29  ;;  %2859 = vmatpush1.bf16.msra.mxu0 %v2858_v0  ;;  %v2045_v29 = vld [vmem:[#allocation14 + $0x198] sm:$0xff]  ;;  %v2003_v0 = vld [vmem:[#allocation14 + $0x48] sm:$0xff] }
 0xd79   : > { %2893 = vmatprep.subr.bf16.mxu0 %v2892_v22  ;;  %v2896_v31 = vpack.c.bf16 %v2045_v29, %v2044_v28  ;;  %v2022_v22 = vld [vmem:[#allocation14 + $0xe0] sm:$0xff]  ;;  %v2007_v29 = vld [vmem:[#allocation14 + $0x68] sm:$0xff] }
 0xd7a   : > { %v2006_v28 = vld [vmem:[#allocation14 + $0x60] sm:$0xff] }
 0xdf8   : > { %v1657_v1 = vpop.xlane.xlu1 %1656 }
 0xdf9   : > { %v1659_v2 = vmul.f32 0.0078125, %v1657_v1 }
 0xdfb   : > { %v4020_v3 = vsub.f32 %v1653_v5, %v1659_v2  ;;  %v1723_v5 = vld [vmem:[#allocation13 + $0x148] sm:$0xff] }
 0xdfc   : > { %v2816_v37 = vpack.c.bf16 %v1727_v17, %v1723_v5  ;;  %v1996_v5 = vld [vmem:[#allocation14 + $0x10] sm:$0xff] }
 0xdfd   : > { %v1661_v4 = vmul.f32 %v4020_v3, %v4020_v3  ;;  %v2028_v17 = vld [vmem:[#allocation14 + $0x110] sm:$0xff]  ;;  %v2866_v34 = vpack.c.bf16 %v1997_v32, %v1996_v5  ;;  %v2039_v5 = vld [vmem:[#allocation14 + $0x168] sm:$0xff] }
 0xdfe   : > { %2817 = vmatprep.subr.bf16.mxu1 %v2816_v37  ;;  %v2014_v37 = vld [vmem:[#allocation14 + $0xa0] sm:$0xff]  ;;  %v2898_v39 = vpack.c.bf16 %v2029_v35, %v2028_v17  ;;  %v2024_v32 = vld [vmem:[#allocation14 + $0xf0] sm:$0xff]  ;;  %v2025_v17 = vld [vmem:[#allocation14 + $0xf8] sm:$0xff] }
 0xdff   : > { %1662 = vadd.xlane.f32.xlu0 %v1661_v4  ;;  %2819 = vmatpush1.bf16.msra.mxu1 %v2818_v8  ;;  %v2868_v40 = vpack.c.bf16 %v2015_v38, %v2014_v37  ;;  %v2047_v8 = vld [vmem:[#allocation14 + $0x1a8] sm:$0xff]  ;;  %v2057_v35 = vld [vmem:[#allocation14 + $0x1f8] sm:$0xff]  ;;  %v2886_v37 = vpack.c.bf16 %v2007_v29, %v2006_v28 }
 0xe00   : > { %2821 = vmatprep.subr.bf16.mxu1 %v2820_v45  ;;  %v2900_v36 = vpack.c.bf16 %v2047_v8, %v2046_v41  ;;  %v2031_v45 = vld [vmem:[#allocation14 + $0x128] sm:$0xff]  ;;  %v2009_v41 = vld [vmem:[#allocation14 + $0x78] sm:$0xff] }
 0xe01   : > { %v2902_v48 = vpack.c.bf16 %v2031_v45, %v2030_v44  ;;  %v1748_v45 = vlaneseq }
 0xe03   : > { %2823 = vmatpush1.bf16.msra.mxu1 %v2822_v51  ;;  %v2000_v51 = vld [vmem:[#allocation14 + $0x30] sm:$0xff] }
 0xe04   : > { %2825 = vmatprep.subr.bf16.mxu1 %v2824_v56  ;;  %v2018_v56 = vld [vmem:[#allocation14 + $0xc0] sm:$0xff]  ;;  %v2874_v60 = vpack.c.bf16 %v2001_v52, %v2000_v51 }
 0xe05   : > { %v2876_v62 = vpack.c.bf16 %v2019_v57, %v2018_v56 }
 0xe07   : > { %2827 = vmatpush1.bf16.msra.mxu1 %v2826_v63  ;;  %v2002_v63 = vld [vmem:[#allocation14 + $0x40] sm:$0xff] }
 0xe08   : > { %2861 = vmatprep.subr.bf16.mxu1 %v2860_v18  ;;  %v2005_v18 = vld [vmem:[#allocation14 + $0x58] sm:$0xff] }
 0xe09   : > { %v2882_v25 = vpack.c.bf16 %v2005_v18, %v2004_v16 }
 0xe8c   : > { %v1663_v1 = vpop.xlane.xlu0 %1662 }
 0xe8d   : > { %v1664_v2 = vmul.f32 0.0078125, %v1663_v1  ;;  %v2034_v1 = vld [vmem:[#allocation14 + $0x140] sm:$0xff] }
 0xe8f   : > { %v1665_v4 = vadd.f32 1e-05, %v1664_v2  ;;  %v2908_v2 = vpack.c.bf16 %v2051_v59, %v2050_v58 }
 0xe91   : > { %3152 = vrsqrt.f32 %v1665_v4  ;;  %v2035_v4 = vld [vmem:[#allocation14 + $0x148] sm:$0xff] }
 0xe92   : > { %v2910_v13 = vpack.c.bf16 %v2035_v4, %v2034_v1 }
 0xe9b   : > { %v3153_v6 = vpop.eup %3152 }
 0xe9c   : > { %v1667_v9 = vmul.f32 %v3153_v6, %v4020_v3  ;;  %v2862_v3 = vpack.c.bf16 %v1995_v21, %v1994_v20  ;;  %v2020_v6 = vld [vmem:[#allocation14 + $0xd0] sm:$0xff]  ;;  %v2037_v21 = vld [vmem:[#allocation14 + $0x158] sm:$0xff] }
 0xe9e   : > { %v1674_v11 = vmul.f32 %v2423_v7, %v1667_v9  ;;  %v2021_v7 = vld [vmem:[#allocation14 + $0xd8] sm:$0xff]  ;;  %v2052_v9 = vld [vmem:[#allocation14 + $0x1d0] sm:$0xff] }
 0xe9f   : > { %v2880_v15 = vpack.c.bf16 %v2021_v7, %v2020_v6 }
 0xea0   : > { %v4031_v12 = vadd.f32 %v2424_v10, %v1674_v11  ;;  %v2053_v10 = vld [vmem:[#allocation14 + $0x1d8] sm:$0xff]  ;;  %v2878_v11 = vpack.c.bf16 %v2003_v0, %v2002_v63 }
 0xea1   : > { %v2912_v20 = vpack.c.bf16 %v2053_v10, %v2052_v9 }
 0xea2   : > { %1833 = vmatmul.mubr.f32.vlgmr.msra.gmra.mrb[16].mxu1 %v4031_v12  ;;  %1904 = vmatmul.mubr.f32.vlgmr.msra.gmra.mrb[4].mxu0 %v4031_v12 }
 0xea3   : > { %2863 = vmatpush3.bf16.msra.mxu1 %v2862_v3  ;;  %2895 = vmatpush3.bf16.msra.mxu0 %v2894_v26  ;;  %v2023_v3 = vld [vmem:[#allocation14 + $0xe8] sm:$0xff]  ;;  %v2914_v26 = vpack.c.bf16 %v2037_v21, %v2036_v19 }
 0xea4   : > { %2865 = vmatprep.subr.bf16.mxu1 %v2864_v30  ;;  %2897 = vmatprep.subr.bf16.mxu0 %v2896_v31  ;;  %v2884_v27 = vpack.c.bf16 %v2023_v3, %v2022_v22  ;;  %v2038_v30 = vld [vmem:[#allocation14 + $0x160] sm:$0xff]  ;;  %v2916_v31 = vpack.c.bf16 %v2055_v24, %v2054_v23 }
 0xea5   : > { %v2918_v38 = vpack.c.bf16 %v2039_v5, %v2038_v30 }
 0xea7   : > { %2867 = vmatpush3.bf16.msra.mxu1 %v2866_v34  ;;  %2899 = vmatpush3.bf16.msra.mxu0 %v2898_v39  ;;  %v2056_v34 = vld [vmem:[#allocation14 + $0x1f0] sm:$0xff]  ;;  %v2888_v39 = vpack.c.bf16 %v2025_v17, %v2024_v32 }
 0xea8   : > { %2869 = vmatprep.subr.bf16.mxu1 %v2868_v40  ;;  %2901 = vmatprep.subr.bf16.mxu0 %v2900_v36  ;;  %v2008_v40 = vld [vmem:[#allocation14 + $0x70] sm:$0xff]  ;;  %v2920_v8 = vpack.c.bf16 %v2057_v35, %v2056_v34  ;;  %v2041_v36 = vld [vmem:[#allocation14 + $0x178] sm:$0xff] }
 0xea9   : > { %v2890_v43 = vpack.c.bf16 %v2009_v41, %v2008_v40  ;;  %v2922_v44 = vpack.c.bf16 %v2041_v36, %v2040_v42 }
 0xeab   : > { %2871 = vmatpush3.bf16.msra.mxu1 %v2870_v46  ;;  %2903 = vmatpush3.bf16.msra.mxu0 %v2902_v48  ;;  %v1749_v46 = vshrl.u32 %v1748_v45, 7 }
 0xeac   : > { %2873 = vmatprep.subr.bf16.mxu1 %v2872_v49  ;;  %2905 = vmatprep.subr.bf16.mxu0 %v2904_v53 }
 0xead   : > { %v1750_v33 = vsub.s32 0, %v1749_v46  ;;  %v1758_v14 = vsub.s32 2, %v1749_v46  ;;  %v1754_v48 = vsub.s32 1, %v1749_v46  ;;  %v1762_v49 = vsub.s32 3, %v1749_v46 }
 0xeaf   : > { %2875 = vmatpush3.bf16.msra.mxu1 %v2874_v60  ;;  %2907 = vmatpush3.bf16.msra.mxu0 %v2906_v61  ;;  %v1751_v50 = vrot.slane %v1746_v47, %v1750_v33  ;;  %v1759_v51 = vrot.slane %v1746_v47, %v1758_v14  ;;  %v1755_v52 = vrot.slane %v1746_v47, %v1754_v48 }
 0xeb0   : > { %2877 = vmatprep.subr.bf16.mxu1 %v2876_v62  ;;  %2909 = vmatprep.subr.bf16.mxu0 %v2908_v2  ;;  %v1763_v53 = vrot.slane %v1746_v47, %v1762_v49 }
 0xeb3   : > { %2879 = vmatpush3.bf16.msra.mxu1 %v2878_v11  ;;  %2911 = vmatpush3.bf16.msra.mxu0 %v2910_v13 }
 0xeb4   : > { %2881 = vmatprep.subr.bf16.mxu1 %v2880_v15  ;;  %2913 = vmatprep.subr.bf16.mxu0 %v2912_v20 }
 0xeb7   : > { %2883 = vmatpush3.bf16.msra.mxu1 %v2882_v25  ;;  %2915 = vmatpush3.bf16.msra.mxu0 %v2914_v26 }
 0xeb8   : > { %2885 = vmatprep.subr.bf16.mxu1 %v2884_v27  ;;  %2917 = vmatprep.subr.bf16.mxu0 %v2916_v31 }
 0xebb   : > { %2887 = vmatpush3.bf16.msra.mxu1 %v2886_v37  ;;  %2919 = vmatpush3.bf16.msra.mxu0 %v2918_v38 }
 0xebc   : > { %2889 = vmatprep.subr.bf16.mxu1 %v2888_v39  ;;  %2921 = vmatprep.subr.bf16.mxu0 %v2920_v8 }
 0xebf   : > { %2891 = vmatpush3.bf16.msra.mxu1 %v2890_v43  ;;  %2923 = vmatpush3.bf16.msra.mxu0 %v2922_v44 }
 0xf75   : > { %v1834_v54 = vpop.f32.mrb[16].mxu1  ;;  %v1905_v55 = vpop.f32.mrb[4].mxu0 }
 0xf76   : > { %v4038_v56 = vadd.f32 %v1834_v54, %v1751_v50  ;;  %v4040_v57 = vadd.f32 %v1905_v55, %v1759_v51  ;;  %v1836_v58 = vpop.f32.mrb[17].mxu1  ;;  %v1907_v59 = vpop.f32.mrb[5].mxu0 }
 0xf77   : > { %v4042_v60 = vadd.f32 %v1836_v58, %v1755_v52  ;;  %v4044_v61 = vadd.f32 %v1907_v59, %v1763_v53 }
 0xf78   : > { %v1910_v62 = vmul.f32 0.0029028396, %v4038_v56  ;;  %v1950_v63 = vmul.f32 1.656161e-10, %v4038_v56  ;;  %v1912_v0 = vmul.f32 0.0029028396, %v4040_v57 }
 0xf79   : > { %v1911_v1 = vmul.f32 0.0029028396, %v4042_v60  ;;  %v1951_v2 = vmul.f32 1.656161e-10, %v4042_v60  ;;  %v1913_v4 = vmul.f32 0.0029028396, %v4044_v61 }
 0xf7a   : > { %v1953_v6 = vmul.f32 1.656161e-10, %v4044_v61  ;;  %v1914_v7 = vadd.f32 0.0243559, %v1910_v62  ;;  %v1954_v9 = vadd.f32 0.037466828, %v1950_v63 }
 0xf7b   : > { %v1915_v10 = vadd.f32 0.0243559, %v1911_v1  ;;  %v1955_v11 = vadd.f32 0.037466828, %v1951_v2  ;;  %v1917_v13 = vadd.f32 0.0243559, %v1913_v4 }
 0xf7c   : > { %v1957_v15 = vadd.f32 0.037466828, %v1953_v6  ;;  %v1918_v16 = vmul.f32 %v1914_v7, %v4038_v56  ;;  %v1958_v18 = vmul.f32 %v1954_v9, %v4038_v56  ;;  %v1916_v19 = vadd.f32 0.0243559, %v1912_v0 }
 0xf7d   : > { %v1919_v20 = vmul.f32 %v1915_v10, %v4042_v60  ;;  %v1959_v21 = vmul.f32 %v1955_v11, %v4042_v60  ;;  %v1921_v22 = vmul.f32 %v1917_v13, %v4044_v61  ;;  %v1952_v3 = vmul.f32 1.656161e-10, %v4040_v57 }
 0xf7e   : > { %v1961_v23 = vmul.f32 %v1957_v15, %v4044_v61  ;;  %v1922_v24 = vadd.f32 0.1302272, %v1918_v16  ;;  %v1962_v25 = vadd.f32 0.17927647, %v1958_v18  ;;  %v1920_v26 = vmul.f32 %v1916_v19, %v4040_v57 }
 0xf7f   : > { %v1923_v27 = vadd.f32 0.1302272, %v1919_v20  ;;  %v1963_v28 = vadd.f32 0.17927647, %v1959_v21  ;;  %v1925_v29 = vadd.f32 0.1302272, %v1921_v22 }
 0xf80   : > { %v1965_v30 = vadd.f32 0.17927647, %v1961_v23  ;;  %v1926_v31 = vmul.f32 %v1922_v24, %v4038_v56  ;;  %v1966_v5 = vmul.f32 %v1962_v25, %v4038_v56  ;;  %v1956_v35 = vadd.f32 0.037466828, %v1952_v3 }
 0xf81   : > { %v1927_v32 = vmul.f32 %v1923_v27, %v4042_v60  ;;  %v1967_v17 = vmul.f32 %v1963_v28, %v4042_v60  ;;  %v1929_v34 = vmul.f32 %v1925_v29, %v4044_v61  ;;  %v1924_v39 = vadd.f32 0.1302272, %v1920_v26  ;;  %v2425_v27 = vld [vmem:[%s4251_s29] ss:$0 sm:$0xff] }
 0xf82   : > { %v1969_v37 = vmul.f32 %v1965_v30, %v4044_v61  ;;  %v1970_v38 = vadd.f32 -0.066750154, %v1966_v5  ;;  %v1960_v41 = vmul.f32 %v1956_v35, %v4040_v57  ;;  %v1930_v45 = vadd.f32 0.41586363, %v1926_v31 }
 0xf83   : > { %v1971_v40 = vadd.f32 -0.066750154, %v1967_v17  ;;  %v1931_v8 = vadd.f32 0.41586363, %v1927_v32  ;;  %v1933_v44 = vadd.f32 0.41586363, %v1929_v34  ;;  %v1928_v47 = vmul.f32 %v1924_v39, %v4040_v57 }
 0xf84   : > { %v1973_v42 = vadd.f32 -0.066750154, %v1969_v37  ;;  %v1974_v36 = vmul.f32 %v1970_v38, %v4038_v56  ;;  %v1964_v46 = vadd.f32 0.17927647, %v1960_v41  ;;  %v1934_v55 = vmul.f32 %v1930_v45, %v4038_v56 }
 0xf85   : > { %v1975_v43 = vmul.f32 %v1971_v40, %v4042_v60  ;;  %v1935_v50 = vmul.f32 %v1931_v8, %v4042_v60  ;;  %v1937_v54 = vmul.f32 %v1933_v44, %v4044_v61  ;;  %v1932_v62 = vadd.f32 0.41586363, %v1928_v47 }
 0xf86   : > { %v1977_v33 = vmul.f32 %v1973_v42, %v4044_v61  ;;  %v1978_v14 = vand.u32 2147483647, %v1974_v36  ;;  %v1968_v49 = vmul.f32 %v1964_v46, %v4040_v57  ;;  %v1938_v2 = vadd.f32 0.5080497, %v1934_v55  ;;  %v2427_v42 = vld [vmem:[%s4254_s16] ss:$0 sm:$0xff] }
 0xf87   : > { %v1979_v48 = vand.u32 2147483647, %v1975_v43  ;;  %v1939_v0 = vadd.f32 0.5080497, %v1935_v50  ;;  %v1941_v1 = vadd.f32 0.5080497, %v1937_v54  ;;  %v1936_v6 = vmul.f32 %v1932_v62, %v4040_v57 }
 0xf88   : > { %v1981_v51 = vand.u32 2147483647, %v1977_v33  ;;  %v1982_v52 = vadd.f32 1.0, %v1978_v14  ;;  %v1972_v58 = vadd.f32 -0.066750154, %v1968_v49  ;;  %v1942_v11 = vmul.f32 %v1938_v2, %v4038_v56 }
 0xf89   : > { %v1983_v53 = vadd.f32 1.0, %v1979_v48  ;;  %v1943_v9 = vmul.f32 %v1939_v0, %v4042_v60  ;;  %v1945_v10 = vmul.f32 %v1941_v1, %v4044_v61  ;;  %v1940_v13 = vadd.f32 0.5080497, %v1936_v6 }
 0xf8a   : > { %v1985_v59 = vadd.f32 1.0, %v1981_v51  ;;  %3154 = vrcp.f32 %v1982_v52  ;;  %v1976_v63 = vmul.f32 %v1972_v58, %v4040_v57  ;;  %v1946_v20 = vadd.f32 -0.0012423594, %v1942_v11 }
 0xf8b   : > { %3156 = vrcp.f32 %v1983_v53  ;;  %v1947_v16 = vadd.f32 -0.0012423594, %v1943_v9  ;;  %v1949_v19 = vadd.f32 -0.0012423594, %v1945_v10  ;;  %v1944_v3 = vmul.f32 %v1940_v13, %v4040_v57 }
 0xf8c   : > { %3158 = vrcp.f32 %v1985_v59  ;;  %v1980_v4 = vand.u32 2147483647, %v1976_v63 }
 0xf8d   : > { %v1948_v60 = vadd.f32 -0.0012423594, %v1944_v3 }
 0xf8e   : > { %v1984_v7 = vadd.f32 1.0, %v1980_v4 }
 0xf90   : > { %3160 = vrcp.f32 %v1984_v7 }
 0xf94   : > { %v3155_v15 = vpop.eup %3154 }
 0xf95   : > { %v3157_v18 = vpop.eup %3156  ;;  %v1990_v24 = vmul.f32 %v3155_v15, %v1946_v20 }
 0xf96   : > { %v3159_v21 = vpop.eup %3158  ;;  %v1991_v22 = vmul.f32 %v3157_v18, %v1947_v16 }
 0xf97   : > { %v1993_v23 = vmul.f32 %v3159_v21, %v1949_v19 }
 0xf98   : > { %2129 = vmatprep.mubr.f32.mxu1 %v1991_v22 }
 0xf99   : > { %2199 = vmatprep.mubr.f32.mxu0 %v1993_v23  ;;  %2130 = vmatmul.mubr.f32.vlgmr.msra.gmra.mrb[18].mxu1 %v1990_v24 }
 0xf9a   : > { %v3161_v61 = vpop.eup %3160 }
 0xf9b   : > { %v1992_v25 = vmul.f32 %v3161_v61, %v1948_v60 }
 0xf9d   : > { %2200 = vmatmul.mubr.f32.vlgmr.msra.gmra.mrb[6].mxu0 %v1992_v25 }
0x106c   : > { %v2524_v56 = vpop.f32.mrb[18].mxu1 }
0x106d   : > { %v2525_v26 = vpop.f32.mrb[19].mxu1 }
0x106e   : > { %v2526_v28 = vadd.f32 %v2525_v26, %v2524_v56 }
0x1070   : > { %v2559_v29 = vpop.f32.mrb[6].mxu0  ;;  %v2132_v30 = vadd.f32 %v2526_v28, %v2425_v27 }
0x1071   : > { %v2560_v57 = vpop.f32.mrb[7].mxu0 }
0x1072   : > { %v2561_v31 = vadd.f32 %v2560_v57, %v2559_v29 }
0x1074   : > { %v2202_v5 = vadd.f32 %v2561_v31, %v2132_v30 }
0x1076   : > { %v2205_v32 = vadd.f32 %v2202_v5, %v4031_v12  ;;  %v2426_v12 = vld [vmem:[%s4253_s17] ss:$0 sm:$0xff]  ;;  %s3340_s17 = scalar_lea.vmem %s3339_s7, 256 }
0x1077   : > { %p3342_p1 = scmp.lt.s32.totalorder %s3340_s17, %s3334_s2 }
0x1078   : > { %2208 = vadd.xlane.f32.xlu1 %v2205_v32 }
0x1079   : > { %p3343_p13 = por %p3342_p1, %p3341_p8 }
0x107b   : > { %p3344_p7 = pnand %p3343_p13, %p3337_p11 }
0x1105   : > { %v2209_v17 = vpop.xlane.xlu1 %2208 }
0x1106   : > { %v2210_v34 = vmul.f32 0.0078125, %v2209_v17 }
0x1108   : > { %v2211_v35 = vsub.f32 %v2205_v32, %v2210_v34 }
0x110a   : > { %v2212_v37 = vmul.f32 %v2211_v35, %v2211_v35 }
0x110c   : > { %2213 = vadd.xlane.f32.xlu1 %v2212_v37 }
0x1199   : > { %v2214_v38 = vpop.xlane.xlu1 %2213 }
0x119a   : > { %v2215_v39 = vmul.f32 0.0078125, %v2214_v38 }
0x119c   : > { %v2216_v40 = vadd.f32 1e-05, %v2215_v39 }
0x119e   : > { %3162 = vrsqrt.f32 %v2216_v40 }
0x11a8   : > { %v3163_v41 = vpop.eup %3162 }
0x11a9   : > { %v2218_v8 = vmul.f32 %v3163_v41, %v2211_v35 }
0x11ab   : > { %v2225_v36 = vmul.f32 %v2426_v12, %v2218_v8 }
0x11ad   : > { %v2232_v43 = vadd.f32 %v2427_v42, %v2225_v36 }
0x11af   : > { %2233 = vst [vmem:[%s599_s0] sm:$0xff] %v2232_v43 }
0x11b0   : > { %3347 = shalt.err (!%p3344_p7)
}
0x11b1   : > { %s3348_s14 = scalar_lea.hbm %s4099_s9, 128  ;;  %s3352_s24 = scalar_lea.hbm %s4255_s30, 512 }
0x11b2   : > { %p3349_p0 = scmp.ne.s32.totalorder %s4099_s9, %s3348_s14  ;;  %p3353_p3 = scmp.lt.u32.totalorder %s4099_s9, %s4255_s30 }
0x11b3   : > { %p3354_p12 = scmp.lt.u32.totalorder %s3352_s24, %s3348_s14  ;;  %p3356_p2 = scmp.lt.u32.totalorder %s3348_s14, %s4099_s9 }
0x11b4   : > { %p3350_p4 = pnand %p3349_p0, %p4257_p6 }
0x11b5   : > { %p3355_p5 = por %p3354_p12, %p3353_p3 }
0x11b6   : > { %p3351_p10 = pneg %p3350_p4 }
0x11b7   : > { %p3357_p9 = por %p3356_p2, %p3355_p5 }
0x11b9   : > { %p3358_p11 = pnand %p3357_p9, %p3351_p10 }
0x11bb   : > { %3361 = shalt.err (!%p3358_p11)
}
0x11bc   : > { %2962 = dma.vmem_to_hbm [thread:$0]  (%p4257_p6), %s4101_s12, 128, %s4099_s9, %s2235_s25  }
0x11bd PF: > { %p2999_p8 = scmp.ge.s32.totalorder %s3468_s28, 2  ;;  %s2262_s21 = sand.u32 1, %s3428_s18  }
0x11be   : > { %p4258_p1 = scmp.ne.s32.totalorder %s4235_s3, 0  ;;  %s2263_s29 = scalar_lea.sflag [#allocation7], %s2262_s21 }
0x11c0   : > { %p2985_p13 = pnand %p2999_p8, %p4258_p1 }
0x11c2   : > { %3423 = dma.done.wait (!%p2985_p13), %s2263_s29, 128  }
0x11c3   : > { %3425 = vsyncadd (!%p2985_p13), %s2263_s29, 4294967168  ;;  %s34_s28 = sadd.s32 1, %s3468_s28   ;;  %s4259_s10 = sld [smem:[#allocation26_spill]] }
0x11c4   : > { %p31_p7 = scmp.ge.s32.totalorder %s34_s28, 6   ;;  %s4260_s18 = smov %s3432_s19 }
0x11c5   : > { %s4261_s19 = smov %s3436_s20  ;;  %s4262_s20 = smov %s3817_s6 }
0x11c6   : > { %s4263_s21 = smov %s3444_s22  ;;  %s4264_s22 = smov %s3448_s23 }
0x11c7   : > { %s4265_s23 = smov %s3814_s8  ;;  %s4266_s24 = smov %s3460_s26 }
0x11c8   : > { %s4267_s25 = smov %s3464_s27  ;;  %s4268_s26 = smov %s4271_s13 }
0x11c9   : > { %s4269_s27 = smov %s4259_s10  ;;  %33 = sbr.rel (!%p31_p7) target bundleno = 29 (0x1d), region = 150 }
0x11d0   :  { %2268 = vsyncpa [#allocation6], 1 }
0x11d1   :  { %2270 = vsyncpa [#allocation6 + $0x1], 1 }
0x11d2   :  { %2271 = vsyncpa [#allocation9], 1 }
0x11d3   :  { %2272 = vsyncpa [#allocation12], 1 }
0x11d4   :  { %2273 = vsyncpa [#allocation15], 1 }
0x11d5   :  { %2274 = vsyncpa [#allocation7], 1 }
0x11d6   :  { %2276 = vsyncpa [#allocation7 + $0x1], 1 }

</bundles_post_ra>
